<compile_context>
chip_gen: v6e
topology: v6e:2x2x1
jax: 0.10.0
libtpu: 0.0.40
codegen_flags: <defaults>
</compile_context>

<pallas_src>
import functools

import jax
import jax.numpy as jnp
from jax import lax
from jax.experimental import pallas as pl
from jax.experimental.pallas import tpu as pltpu

_HIDDEN_PAD = 128   # every layer padded to 128x128 (widest real layer is 128)


def _reduce_chunks(x, chunk, op):
    """x: (B, n*chunk). Elementwise-reduce the n width-`chunk` groups -> (B, chunk)."""
    n = x.shape[1] // chunk
    while n > 1:
        half = n // 2
        red = op(x[:, : half * chunk], x[:, half * chunk: 2 * half * chunk])
        if n % 2:
            red = jnp.concatenate([red, x[:, 2 * half * chunk:]], axis=1)
        x = red
        n = half + (n % 2)
    return x


def _t_t_gen_kernel(t_ref, w_hbm, b_ref, out_ref, wbuf, sem,
                    *, num_classes, num_layers):
    C = num_classes
    CC = C * C
    last = num_layers - 1

    # ---- Manual double-buffered weight streaming (hides the weight DMA) ----
    # Each 64 KiB padded layer slab is fetched one layer ahead of its matmul;
    # only layer 0's slab is on the critical path.  Re-issued per grid step,
    # so the pattern is self-contained under megacore ("parallel") sharding.
    copies = [None] * num_layers
    copies[0] = pltpu.make_async_copy(w_hbm.at[0], wbuf.at[0], sem.at[0])
    copies[0].start()
    if num_layers > 1:
        copies[1] = pltpu.make_async_copy(w_hbm.at[1], wbuf.at[1], sem.at[1])
        copies[1].start()

    t = t_ref[...]                                             # (tb, 1)

    # Layer 0: in_dim == 1, so x @ W0 == t * W0-row (no K=1 matmul).  The ref
    # slice loads only one (1, 128) row into vregs, not the full padded block.
    copies[0].wait()
    h = jnp.maximum(t * wbuf[0, 0:1, :] + b_ref[0], 0.0)       # (tb, 128)

    # Hidden + final layers: uniform zero-padded 128x128 MXU matmuls, kept as
    # one unrolled trace (no grid over L: per-step overhead would exceed the
    # DMA it could hide).
    for l in range(1, num_layers):
        slot = l & 1
        copies[l].wait()
        if l + 1 < num_layers:
            copies[l + 1] = pltpu.make_async_copy(
                w_hbm.at[l + 1], wbuf.at[1 - slot], sem.at[1 - slot])
            copies[l + 1].start()
        h = jnp.dot(h, wbuf[slot], preferred_element_type=jnp.float32) + b_ref[l]
        if l < last:
            h = jnp.maximum(h, 0.0)

    # Final layer's padded columns (>= C*C) are exactly 0 (zero weights/bias).
    entries = h[:, :CC]                                        # (tb, C*C)

    # Softmax over dim=-2 of the (tb, C, C) view == per-column softmax over the
    # stride-C groups of the flat layout.  Column stats via a halving tree of
    # whole-tile VPU ops; exp / normalize once over the tile.
    gmax = _reduce_chunks(entries, C, jnp.maximum)             # (tb, C)
    gmax_b = jnp.concatenate([gmax] * C, axis=1)               # (tb, C*C)
    e = jnp.exp(entries - gmax_b)                              # single EUP pass
    gsum = _reduce_chunks(e, C, jnp.add)                       # (tb, C)
    inv = pl.reciprocal(gsum, approx=False)                    # exact: keeps 1e-5 tol
    sig = e * jnp.concatenate([inv] * C, axis=1)               # (tb, C*C)

    # Identity baked from a single iota: flat pos p = i*C + j is on the
    # diagonal iff p == j*(C+1)  (no vector div/mod).
    p = lax.broadcasted_iota(jnp.int32, sig.shape, 1)          # (tb, C*C)
    jmap = jnp.concatenate(
        [lax.broadcasted_iota(jnp.int32, (sig.shape[0], C), 1)] * C, axis=1)
    ident = (p == jmap * (C + 1)).astype(jnp.float32)

    res = 0.5 * (ident + sig)                                  # (tb, C*C)

    # Lane-dense full-width store (no 16-lane vst.msk): pad with the exactly-
    # zero tail of h; the wrapper slices [:, :C*C].
    out_ref[...] = jnp.concatenate([res, h[:, CC:]], axis=1)   # (tb, 128)


def init_params(key, num_classes):
    """Deterministic init mimicking PyTorch nn.Linear default (U(-1/sqrt(in), 1/sqrt(in)))."""
    dims = [1, 16, 32, 64, 128, 128, 128, 128, 128, 128, 128,
            num_classes * num_classes]
    params = []
    for i in range(len(dims) - 1):
        key, kw, kb = jax.random.split(key, 3)
        bound = 1.0 / (dims[i] ** 0.5)
        W = jax.random.uniform(kw, (dims[i], dims[i + 1]), jnp.float32,
                               minval=-bound, maxval=bound)
        b = jax.random.uniform(kb, (1, dims[i + 1]), jnp.float32,
                               minval=-bound, maxval=bound)
        params.append((W, b))
    return params


def pack_params(params):
    """Zero-pad every Linear to (_HIDDEN_PAD x _HIDDEN_PAD) and stack into 2 operands."""
    L = len(params)
    Wp = jnp.zeros((L, _HIDDEN_PAD, _HIDDEN_PAD), jnp.float32)
    bp = jnp.zeros((L, 1, _HIDDEN_PAD), jnp.float32)
    for l, (W, b) in enumerate(params):
        # TODO(synk): for num_classes > 11 the final layer output (C*C) exceeds 128
        # and would need its own unpadded operand.
        assert W.shape[0] <= _HIDDEN_PAD and W.shape[1] <= _HIDDEN_PAD
        Wp = Wp.at[l, :W.shape[0], :W.shape[1]].set(W)
        bp = bp.at[l, :, :b.shape[1]].set(b)
    return Wp, bp


def t_t_gen_forward(t, w_packed, b_packed, num_classes, *, block_b=256):
    B = t.shape[0]
    C = num_classes
    CC = C * C
    assert CC <= _HIDDEN_PAD, "num_classes > 11 needs an unpadded final layer"
    num_layers = w_packed.shape[0]

    # Row tile: full batch when small (block == full array sidesteps the (8,128)
    # rule); otherwise a 256-row MXU-width tile with B padded up to a multiple.
    if B <= block_b:
        tb, Bp = B, B
        t_in = t
    else:
        tb = block_b
        Bp = ((B + tb - 1) // tb) * tb
        t_in = jnp.pad(t, ((0, Bp - B), (0, 0))) if Bp != B else t

    kernel = functools.partial(_t_t_gen_kernel,
                               num_classes=num_classes,
                               num_layers=num_layers)
    out_pad = pl.pallas_call(
        kernel,
        out_shape=jax.ShapeDtypeStruct((Bp, _HIDDEN_PAD), jnp.float32),
        grid_spec=pltpu.PrefetchScalarGridSpec(
            num_scalar_prefetch=0,
            grid=(Bp // tb,),
            in_specs=[
                pl.BlockSpec((tb, 1), lambda i: (i, 0)),
                pl.BlockSpec(memory_space=pl.ANY),     # weights stay in HBM, DMA'd manually
                pl.BlockSpec((num_layers, 1, _HIDDEN_PAD), lambda i: (0, 0, 0)),
            ],
            out_specs=pl.BlockSpec((tb, _HIDDEN_PAD), lambda i: (i, 0)),
            scratch_shapes=[
                pltpu.VMEM((2, _HIDDEN_PAD, _HIDDEN_PAD), jnp.float32),
                pltpu.SemaphoreType.DMA((2,)),
            ]),
        compiler_params=pltpu.CompilerParams(
            dimension_semantics=("parallel",)),        # batch axis -> both v7x TCs
    )(t_in, w_packed, b_packed)
    return out_pad[:B, :CC].reshape(B, C, C)


def t_t_gen_reference(t, params, num_classes):
    """Pure-JAX reference mirroring the PyTorch forward."""
    h = t
    for i, (W, b) in enumerate(params):
        h = h @ W + b
        if i < len(params) - 1:
            h = jnp.maximum(h, 0.0)
    entries = h.reshape(t.shape[0], num_classes, num_classes)
    sig = jax.nn.softmax(entries, axis=-2)
    return 0.5 * (jnp.eye(num_classes, dtype=jnp.float32) + sig)


if __name__ == "__main__":
    num_classes = 4
    batch = 8

    key = jax.random.PRNGKey(0)
    key_t, key_p = jax.random.split(key)
    t = jax.random.uniform(key_t, (batch, 1), jnp.float32)
    params = init_params(key_p, num_classes)
    w_packed, b_packed = pack_params(params)

    T = t_t_gen_forward(t, w_packed, b_packed, num_classes)
    T = jax.block_until_ready(T)

    T_ref = t_t_gen_reference(t, params, num_classes)
    assert T.shape == (batch, num_classes, num_classes)
    assert jnp.allclose(T, T_ref, atol=1e-5, rtol=1e-5), "mismatch vs JAX reference"

    print("KERNEL_OK")
</pallas_src>

<mosaic_0001>
module attributes {stable_mosaic.version = 11 : i64} {
  func.func @_t_t_gen_kernel(%arg0: i32, %arg1: memref<8x1xf32, #tpu.memory_space<vmem>>, %arg2: memref<11x128x128xf32, #tpu.memory_space<any>>, %arg3: memref<11x1x128xf32, #tpu.memory_space<vmem>>, %arg4: memref<8x128xf32, #tpu.memory_space<vmem>>, %arg5: memref<2x128x128xf32, #tpu.memory_space<vmem>>, %arg6: memref<2x!tpu.dma_semaphore, #tpu.memory_space<semaphore_mem>>) attributes {dimension_semantics = [#tpu.dimension_semantics<parallel>], iteration_bounds = array<i64: 1>, scalar_prefetch = 0 : i64, scratch_operands = 2 : i64, tpu.core_type = #tpu.core_type<tc>, window_params = [{transform_indices = @transform_0, window_bounds = array<i64: 8, 1>}, {}, {pipeline_mode = #tpu.pipeline_mode<synchronous>, transform_indices = @transform_2, window_bounds = array<i64: 11, 1, 128>}, {transform_indices = @transform_3, window_bounds = array<i64: 8, 128>}]} {
    %c0_i32 = arith.constant 0 : i32
    %c0_i32_0 = arith.constant 0 : i32
    %c0_i32_1 = arith.constant 0 : i32
    %c0_i32_2 = arith.constant 0 : i32
    %c0_i32_3 = arith.constant 0 : i32
    %0 = tpu.memref_slice %arg2[%c0_i32, %c0_i32_2, %c0_i32_3] : memref<11x128x128xf32, #tpu.memory_space<any>> -> memref<1x128x128xf32, #tpu.memory_space<any>>
    %1 = tpu.memref_squeeze %0 : memref<1x128x128xf32, #tpu.memory_space<any>> -> memref<128x128xf32, #tpu.memory_space<any>>
    %c0_i32_4 = arith.constant 0 : i32
    %c0_i32_5 = arith.constant 0 : i32
    %2 = tpu.memref_slice %arg5[%c0_i32_0, %c0_i32_4, %c0_i32_5] : memref<2x128x128xf32, #tpu.memory_space<vmem>> -> memref<1x128x128xf32, #tpu.memory_space<vmem>>
    %3 = tpu.memref_squeeze %2 : memref<1x128x128xf32, #tpu.memory_space<vmem>> -> memref<128x128xf32, #tpu.memory_space<vmem>>
    %4 = tpu.memref_slice %arg6[%c0_i32_1] : memref<2x!tpu.dma_semaphore, #tpu.memory_space<semaphore_mem>> -> memref<1x!tpu.dma_semaphore, #tpu.memory_space<semaphore_mem>>
    %5 = tpu.memref_squeeze %4 : memref<1x!tpu.dma_semaphore, #tpu.memory_space<semaphore_mem>> -> memref<!tpu.dma_semaphore, #tpu.memory_space<semaphore_mem>>
    tpu.enqueue_dma source(%1 : memref<128x128xf32, #tpu.memory_space<any>>) target(%3 : memref<128x128xf32, #tpu.memory_space<vmem>>) target_semaphore(%5 : memref<!tpu.dma_semaphore, #tpu.memory_space<semaphore_mem>>)
    %c1_i32 = arith.constant 1 : i32
    %c1_i32_6 = arith.constant 1 : i32
    %c1_i32_7 = arith.constant 1 : i32
    %c0_i32_8 = arith.constant 0 : i32
    %c0_i32_9 = arith.constant 0 : i32
    %6 = tpu.memref_slice %arg2[%c1_i32, %c0_i32_8, %c0_i32_9] : memref<11x128x128xf32, #tpu.memory_space<any>> -> memref<1x128x128xf32, #tpu.memory_space<any>>
    %7 = tpu.memref_squeeze %6 : memref<1x128x128xf32, #tpu.memory_space<any>> -> memref<128x128xf32, #tpu.memory_space<any>>
    %c0_i32_10 = arith.constant 0 : i32
    %c0_i32_11 = arith.constant 0 : i32
    %8 = tpu.memref_slice %arg5[%c1_i32_6, %c0_i32_10, %c0_i32_11] : memref<2x128x128xf32, #tpu.memory_space<vmem>> -> memref<1x128x128xf32, #tpu.memory_space<vmem>>
    %9 = tpu.memref_squeeze %8 : memref<1x128x128xf32, #tpu.memory_space<vmem>> -> memref<128x128xf32, #tpu.memory_space<vmem>>
    %10 = tpu.memref_slice %arg6[%c1_i32_7] : memref<2x!tpu.dma_semaphore, #tpu.memory_space<semaphore_mem>> -> memref<1x!tpu.dma_semaphore, #tpu.memory_space<semaphore_mem>>
    %11 = tpu.memref_squeeze %10 : memref<1x!tpu.dma_semaphore, #tpu.memory_space<semaphore_mem>> -> memref<!tpu.dma_semaphore, #tpu.memory_space<semaphore_mem>>
    tpu.enqueue_dma source(%7 : memref<128x128xf32, #tpu.memory_space<any>>) target(%9 : memref<128x128xf32, #tpu.memory_space<vmem>>) target_semaphore(%11 : memref<!tpu.dma_semaphore, #tpu.memory_space<semaphore_mem>>)
    %c0 = arith.constant 0 : index
    %c0_12 = arith.constant 0 : index
    %12 = vector.load %arg1[%c0, %c0_12] : memref<8x1xf32, #tpu.memory_space<vmem>>, vector<8x1xf32>
    %c0_i32_13 = arith.constant 0 : i32
    %c0_i32_14 = arith.constant 0 : i32
    %c0_i32_15 = arith.constant 0 : i32
    %c0_i32_16 = arith.constant 0 : i32
    %c0_i32_17 = arith.constant 0 : i32
    %13 = tpu.memref_slice %arg2[%c0_i32_13, %c0_i32_16, %c0_i32_17] : memref<11x128x128xf32, #tpu.memory_space<any>> -> memref<1x128x128xf32, #tpu.memory_space<any>>
    %14 = tpu.memref_squeeze %13 : memref<1x128x128xf32, #tpu.memory_space<any>> -> memref<128x128xf32, #tpu.memory_space<any>>
    %c0_i32_18 = arith.constant 0 : i32
    %c0_i32_19 = arith.constant 0 : i32
    %15 = tpu.memref_slice %arg5[%c0_i32_14, %c0_i32_18, %c0_i32_19] : memref<2x128x128xf32, #tpu.memory_space<vmem>> -> memref<1x128x128xf32, #tpu.memory_space<vmem>>
    %16 = tpu.memref_squeeze %15 : memref<1x128x128xf32, #tpu.memory_space<vmem>> -> memref<128x128xf32, #tpu.memory_space<vmem>>
    %17 = tpu.memref_slice %arg6[%c0_i32_15] : memref<2x!tpu.dma_semaphore, #tpu.memory_space<semaphore_mem>> -> memref<1x!tpu.dma_semaphore, #tpu.memory_space<semaphore_mem>>
    %18 = tpu.memref_squeeze %17 : memref<1x!tpu.dma_semaphore, #tpu.memory_space<semaphore_mem>> -> memref<!tpu.dma_semaphore, #tpu.memory_space<semaphore_mem>>
    tpu.wait_dma2 semaphore(%18 : memref<!tpu.dma_semaphore, #tpu.memory_space<semaphore_mem>>) src(%14 : memref<128x128xf32, #tpu.memory_space<any>>) dst(%16 : memref<128x128xf32, #tpu.memory_space<vmem>>)
    %c0_20 = arith.constant 0 : index
    %c0_21 = arith.constant 0 : index
    %c0_22 = arith.constant 0 : index
    %19 = vector.load %arg5[%c0_20, %c0_21, %c0_22] : memref<2x128x128xf32, #tpu.memory_space<vmem>>, vector<1x1x128xf32>
    %20 = vector.shape_cast %19 : vector<1x1x128xf32> to vector<1x128xf32>
    %21 = vector.broadcast %12 : vector<8x1xf32> to vector<8x128xf32>
    %22 = vector.broadcast %20 : vector<1x128xf32> to vector<8x128xf32>
    %23 = arith.mulf %21, %22 : vector<8x128xf32>
    %c0_23 = arith.constant 0 : index
    %c0_24 = arith.constant 0 : index
    %c0_25 = arith.constant 0 : index
    %24 = vector.load %arg3[%c0_23, %c0_24, %c0_25] : memref<11x1x128xf32, #tpu.memory_space<vmem>>, vector<1x1x128xf32>
    %25 = vector.shape_cast %24 : vector<1x1x128xf32> to vector<1x128xf32>
    %26 = vector.broadcast %25 : vector<1x128xf32> to vector<8x128xf32>
    %27 = arith.addf %23, %26 : vector<8x128xf32>
    %cst = arith.constant 0.000000e+00 : f32
    %28 = vector.broadcast %cst : f32 to vector<8x128xf32>
    %29 = arith.maximumf %27, %28 : vector<8x128xf32>
    %c1_i32_26 = arith.constant 1 : i32
    %c1_i32_27 = arith.constant 1 : i32
    %c1_i32_28 = arith.constant 1 : i32
    %c0_i32_29 = arith.constant 0 : i32
    %c0_i32_30 = arith.constant 0 : i32
    %30 = tpu.memref_slice %arg2[%c1_i32_26, %c0_i32_29, %c0_i32_30] : memref<11x128x128xf32, #tpu.memory_space<any>> -> memref<1x128x128xf32, #tpu.memory_space<any>>
    %31 = tpu.memref_squeeze %30 : memref<1x128x128xf32, #tpu.memory_space<any>> -> memref<128x128xf32, #tpu.memory_space<any>>
    %c0_i32_31 = arith.constant 0 : i32
    %c0_i32_32 = arith.constant 0 : i32
    %32 = tpu.memref_slice %arg5[%c1_i32_27, %c0_i32_31, %c0_i32_32] : memref<2x128x128xf32, #tpu.memory_space<vmem>> -> memref<1x128x128xf32, #tpu.memory_space<vmem>>
    %33 = tpu.memref_squeeze %32 : memref<1x128x128xf32, #tpu.memory_space<vmem>> -> memref<128x128xf32, #tpu.memory_space<vmem>>
    %34 = tpu.memref_slice %arg6[%c1_i32_28] : memref<2x!tpu.dma_semaphore, #tpu.memory_space<semaphore_mem>> -> memref<1x!tpu.dma_semaphore, #tpu.memory_space<semaphore_mem>>
    %35 = tpu.memref_squeeze %34 : memref<1x!tpu.dma_semaphore, #tpu.memory_space<semaphore_mem>> -> memref<!tpu.dma_semaphore, #tpu.memory_space<semaphore_mem>>
    tpu.wait_dma2 semaphore(%35 : memref<!tpu.dma_semaphore, #tpu.memory_space<semaphore_mem>>) src(%31 : memref<128x128xf32, #tpu.memory_space<any>>) dst(%33 : memref<128x128xf32, #tpu.memory_space<vmem>>)
    %c2_i32 = arith.constant 2 : i32
    %c0_i32_33 = arith.constant 0 : i32
    %c0_i32_34 = arith.constant 0 : i32
    %c0_i32_35 = arith.constant 0 : i32
    %c0_i32_36 = arith.constant 0 : i32
    %36 = tpu.memref_slice %arg2[%c2_i32, %c0_i32_35, %c0_i32_36] : memref<11x128x128xf32, #tpu.memory_space<any>> -> memref<1x128x128xf32, #tpu.memory_space<any>>
    %37 = tpu.memref_squeeze %36 : memref<1x128x128xf32, #tpu.memory_space<any>> -> memref<128x128xf32, #tpu.memory_space<any>>
    %c0_i32_37 = arith.constant 0 : i32
    %c0_i32_38 = arith.constant 0 : i32
    %38 = tpu.memref_slice %arg5[%c0_i32_33, %c0_i32_37, %c0_i32_38] : memref<2x128x128xf32, #tpu.memory_space<vmem>> -> memref<1x128x128xf32, #tpu.memory_space<vmem>>
    %39 = tpu.memref_squeeze %38 : memref<1x128x128xf32, #tpu.memory_space<vmem>> -> memref<128x128xf32, #tpu.memory_space<vmem>>
    %40 = tpu.memref_slice %arg6[%c0_i32_34] : memref<2x!tpu.dma_semaphore, #tpu.memory_space<semaphore_mem>> -> memref<1x!tpu.dma_semaphore, #tpu.memory_space<semaphore_mem>>
    %41 = tpu.memref_squeeze %40 : memref<1x!tpu.dma_semaphore, #tpu.memory_space<semaphore_mem>> -> memref<!tpu.dma_semaphore, #tpu.memory_space<semaphore_mem>>
    tpu.enqueue_dma source(%37 : memref<128x128xf32, #tpu.memory_space<any>>) target(%39 : memref<128x128xf32, #tpu.memory_space<vmem>>) target_semaphore(%41 : memref<!tpu.dma_semaphore, #tpu.memory_space<semaphore_mem>>)
    %c1 = arith.constant 1 : index
    %c0_39 = arith.constant 0 : index
    %c0_40 = arith.constant 0 : index
    %42 = vector.load %arg5[%c1, %c0_39, %c0_40] : memref<2x128x128xf32, #tpu.memory_space<vmem>>, vector<1x128x128xf32>
    %43 = vector.shape_cast %42 : vector<1x128x128xf32> to vector<128x128xf32>
    %cst_41 = arith.constant dense<0.000000e+00> : vector<8x128xf32>
    %44 = tpu.matmul %29, %43, %cst_41 {dimension_numbers = #tpu.dot_dimension_numbers<[1], [0], [0], [1], [0, 0, 1, 1], [], []>} : vector<8x128xf32>, vector<128x128xf32>, vector<8x128xf32> -> vector<8x128xf32>
    %c1_42 = arith.constant 1 : index
    %c0_43 = arith.constant 0 : index
    %c0_44 = arith.constant 0 : index
    %45 = vector.load %arg3[%c1_42, %c0_43, %c0_44] : memref<11x1x128xf32, #tpu.memory_space<vmem>>, vector<1x1x128xf32>
    %46 = vector.shape_cast %45 : vector<1x1x128xf32> to vector<1x128xf32>
    %47 = vector.broadcast %46 : vector<1x128xf32> to vector<8x128xf32>
    %48 = arith.addf %44, %47 : vector<8x128xf32>
    %cst_45 = arith.constant 0.000000e+00 : f32
    %49 = vector.broadcast %cst_45 : f32 to vector<8x128xf32>
    %50 = arith.maximumf %48, %49 : vector<8x128xf32>
    %c2_i32_46 = arith.constant 2 : i32
    %c0_i32_47 = arith.constant 0 : i32
    %c0_i32_48 = arith.constant 0 : i32
    %c0_i32_49 = arith.constant 0 : i32
    %c0_i32_50 = arith.constant 0 : i32
    %51 = tpu.memref_slice %arg2[%c2_i32_46, %c0_i32_49, %c0_i32_50] : memref<11x128x128xf32, #tpu.memory_space<any>> -> memref<1x128x128xf32, #tpu.memory_space<any>>
    %52 = tpu.memref_squeeze %51 : memref<1x128x128xf32, #tpu.memory_space<any>> -> memref<128x128xf32, #tpu.memory_space<any>>
    %c0_i32_51 = arith.constant 0 : i32
    %c0_i32_52 = arith.constant 0 : i32
    %53 = tpu.memref_slice %arg5[%c0_i32_47, %c0_i32_51, %c0_i32_52] : memref<2x128x128xf32, #tpu.memory_space<vmem>> -> memref<1x128x128xf32, #tpu.memory_space<vmem>>
    %54 = tpu.memref_squeeze %53 : memref<1x128x128xf32, #tpu.memory_space<vmem>> -> memref<128x128xf32, #tpu.memory_space<vmem>>
    %55 = tpu.memref_slice %arg6[%c0_i32_48] : memref<2x!tpu.dma_semaphore, #tpu.memory_space<semaphore_mem>> -> memref<1x!tpu.dma_semaphore, #tpu.memory_space<semaphore_mem>>
    %56 = tpu.memref_squeeze %55 : memref<1x!tpu.dma_semaphore, #tpu.memory_space<semaphore_mem>> -> memref<!tpu.dma_semaphore, #tpu.memory_space<semaphore_mem>>
    tpu.wait_dma2 semaphore(%56 : memref<!tpu.dma_semaphore, #tpu.memory_space<semaphore_mem>>) src(%52 : memref<128x128xf32, #tpu.memory_space<any>>) dst(%54 : memref<128x128xf32, #tpu.memory_space<vmem>>)
    %c3_i32 = arith.constant 3 : i32
    %c1_i32_53 = arith.constant 1 : i32
    %c1_i32_54 = arith.constant 1 : i32
    %c0_i32_55 = arith.constant 0 : i32
    %c0_i32_56 = arith.constant 0 : i32
    %57 = tpu.memref_slice %arg2[%c3_i32, %c0_i32_55, %c0_i32_56] : memref<11x128x128xf32, #tpu.memory_space<any>> -> memref<1x128x128xf32, #tpu.memory_space<any>>
    %58 = tpu.memref_squeeze %57 : memref<1x128x128xf32, #tpu.memory_space<any>> -> memref<128x128xf32, #tpu.memory_space<any>>
    %c0_i32_57 = arith.constant 0 : i32
    %c0_i32_58 = arith.constant 0 : i32
    %59 = tpu.memref_slice %arg5[%c1_i32_53, %c0_i32_57, %c0_i32_58] : memref<2x128x128xf32, #tpu.memory_space<vmem>> -> memref<1x128x128xf32, #tpu.memory_space<vmem>>
    %60 = tpu.memref_squeeze %59 : memref<1x128x128xf32, #tpu.memory_space<vmem>> -> memref<128x128xf32, #tpu.memory_space<vmem>>
    %61 = tpu.memref_slice %arg6[%c1_i32_54] : memref<2x!tpu.dma_semaphore, #tpu.memory_space<semaphore_mem>> -> memref<1x!tpu.dma_semaphore, #tpu.memory_space<semaphore_mem>>
    %62 = tpu.memref_squeeze %61 : memref<1x!tpu.dma_semaphore, #tpu.memory_space<semaphore_mem>> -> memref<!tpu.dma_semaphore, #tpu.memory_space<semaphore_mem>>
    tpu.enqueue_dma source(%58 : memref<128x128xf32, #tpu.memory_space<any>>) target(%60 : memref<128x128xf32, #tpu.memory_space<vmem>>) target_semaphore(%62 : memref<!tpu.dma_semaphore, #tpu.memory_space<semaphore_mem>>)
    %c0_59 = arith.constant 0 : index
    %c0_60 = arith.constant 0 : index
    %c0_61 = arith.constant 0 : index
    %63 = vector.load %arg5[%c0_59, %c0_60, %c0_61] : memref<2x128x128xf32, #tpu.memory_space<vmem>>, vector<1x128x128xf32>
    %64 = vector.shape_cast %63 : vector<1x128x128xf32> to vector<128x128xf32>
    %cst_62 = arith.constant dense<0.000000e+00> : vector<8x128xf32>
    %65 = tpu.matmul %50, %64, %cst_62 {dimension_numbers = #tpu.dot_dimension_numbers<[1], [0], [0], [1], [0, 0, 1, 1], [], []>} : vector<8x128xf32>, vector<128x128xf32>, vector<8x128xf32> -> vector<8x128xf32>
    %c2 = arith.constant 2 : index
    %c0_63 = arith.constant 0 : index
    %c0_64 = arith.constant 0 : index
    %66 = vector.load %arg3[%c2, %c0_63, %c0_64] : memref<11x1x128xf32, #tpu.memory_space<vmem>>, vector<1x1x128xf32>
    %67 = vector.shape_cast %66 : vector<1x1x128xf32> to vector<1x128xf32>
    %68 = vector.broadcast %67 : vector<1x128xf32> to vector<8x128xf32>
    %69 = arith.addf %65, %68 : vector<8x128xf32>
    %cst_65 = arith.constant 0.000000e+00 : f32
    %70 = vector.broadcast %cst_65 : f32 to vector<8x128xf32>
    %71 = arith.maximumf %69, %70 : vector<8x128xf32>
    %c3_i32_66 = arith.constant 3 : i32
    %c1_i32_67 = arith.constant 1 : i32
    %c1_i32_68 = arith.constant 1 : i32
    %c0_i32_69 = arith.constant 0 : i32
    %c0_i32_70 = arith.constant 0 : i32
    %72 = tpu.memref_slice %arg2[%c3_i32_66, %c0_i32_69, %c0_i32_70] : memref<11x128x128xf32, #tpu.memory_space<any>> -> memref<1x128x128xf32, #tpu.memory_space<any>>
    %73 = tpu.memref_squeeze %72 : memref<1x128x128xf32, #tpu.memory_space<any>> -> memref<128x128xf32, #tpu.memory_space<any>>
    %c0_i32_71 = arith.constant 0 : i32
    %c0_i32_72 = arith.constant 0 : i32
    %74 = tpu.memref_slice %arg5[%c1_i32_67, %c0_i32_71, %c0_i32_72] : memref<2x128x128xf32, #tpu.memory_space<vmem>> -> memref<1x128x128xf32, #tpu.memory_space<vmem>>
    %75 = tpu.memref_squeeze %74 : memref<1x128x128xf32, #tpu.memory_space<vmem>> -> memref<128x128xf32, #tpu.memory_space<vmem>>
    %76 = tpu.memref_slice %arg6[%c1_i32_68] : memref<2x!tpu.dma_semaphore, #tpu.memory_space<semaphore_mem>> -> memref<1x!tpu.dma_semaphore, #tpu.memory_space<semaphore_mem>>
    %77 = tpu.memref_squeeze %76 : memref<1x!tpu.dma_semaphore, #tpu.memory_space<semaphore_mem>> -> memref<!tpu.dma_semaphore, #tpu.memory_space<semaphore_mem>>
    tpu.wait_dma2 semaphore(%77 : memref<!tpu.dma_semaphore, #tpu.memory_space<semaphore_mem>>) src(%73 : memref<128x128xf32, #tpu.memory_space<any>>) dst(%75 : memref<128x128xf32, #tpu.memory_space<vmem>>)
    %c4_i32 = arith.constant 4 : i32
    %c0_i32_73 = arith.constant 0 : i32
    %c0_i32_74 = arith.constant 0 : i32
    %c0_i32_75 = arith.constant 0 : i32
    %c0_i32_76 = arith.constant 0 : i32
    %78 = tpu.memref_slice %arg2[%c4_i32, %c0_i32_75, %c0_i32_76] : memref<11x128x128xf32, #tpu.memory_space<any>> -> memref<1x128x128xf32, #tpu.memory_space<any>>
    %79 = tpu.memref_squeeze %78 : memref<1x128x128xf32, #tpu.memory_space<any>> -> memref<128x128xf32, #tpu.memory_space<any>>
    %c0_i32_77 = arith.constant 0 : i32
    %c0_i32_78 = arith.constant 0 : i32
    %80 = tpu.memref_slice %arg5[%c0_i32_73, %c0_i32_77, %c0_i32_78] : memref<2x128x128xf32, #tpu.memory_space<vmem>> -> memref<1x128x128xf32, #tpu.memory_space<vmem>>
    %81 = tpu.memref_squeeze %80 : memref<1x128x128xf32, #tpu.memory_space<vmem>> -> memref<128x128xf32, #tpu.memory_space<vmem>>
    %82 = tpu.memref_slice %arg6[%c0_i32_74] : memref<2x!tpu.dma_semaphore, #tpu.memory_space<semaphore_mem>> -> memref<1x!tpu.dma_semaphore, #tpu.memory_space<semaphore_mem>>
    %83 = tpu.memref_squeeze %82 : memref<1x!tpu.dma_semaphore, #tpu.memory_space<semaphore_mem>> -> memref<!tpu.dma_semaphore, #tpu.memory_space<semaphore_mem>>
    tpu.enqueue_dma source(%79 : memref<128x128xf32, #tpu.memory_space<any>>) target(%81 : memref<128x128xf32, #tpu.memory_space<vmem>>) target_semaphore(%83 : memref<!tpu.dma_semaphore, #tpu.memory_space<semaphore_mem>>)
    %c1_79 = arith.constant 1 : index
    %c0_80 = arith.constant 0 : index
    %c0_81 = arith.constant 0 : index
    %84 = vector.load %arg5[%c1_79, %c0_80, %c0_81] : memref<2x128x128xf32, #tpu.memory_space<vmem>>, vector<1x128x128xf32>
    %85 = vector.shape_cast %84 : vector<1x128x128xf32> to vector<128x128xf32>
    %cst_82 = arith.constant dense<0.000000e+00> : vector<8x128xf32>
    %86 = tpu.matmul %71, %85, %cst_82 {dimension_numbers = #tpu.dot_dimension_numbers<[1], [0], [0], [1], [0, 0, 1, 1], [], []>} : vector<8x128xf32>, vector<128x128xf32>, vector<8x128xf32> -> vector<8x128xf32>
    %c3 = arith.constant 3 : index
    %c0_83 = arith.constant 0 : index
    %c0_84 = arith.constant 0 : index
    %87 = vector.load %arg3[%c3, %c0_83, %c0_84] : memref<11x1x128xf32, #tpu.memory_space<vmem>>, vector<1x1x128xf32>
    %88 = vector.shape_cast %87 : vector<1x1x128xf32> to vector<1x128xf32>
    %89 = vector.broadcast %88 : vector<1x128xf32> to vector<8x128xf32>
    %90 = arith.addf %86, %89 : vector<8x128xf32>
    %cst_85 = arith.constant 0.000000e+00 : f32
    %91 = vector.broadcast %cst_85 : f32 to vector<8x128xf32>
    %92 = arith.maximumf %90, %91 : vector<8x128xf32>
    %c4_i32_86 = arith.constant 4 : i32
    %c0_i32_87 = arith.constant 0 : i32
    %c0_i32_88 = arith.constant 0 : i32
    %c0_i32_89 = arith.constant 0 : i32
    %c0_i32_90 = arith.constant 0 : i32
    %93 = tpu.memref_slice %arg2[%c4_i32_86, %c0_i32_89, %c0_i32_90] : memref<11x128x128xf32, #tpu.memory_space<any>> -> memref<1x128x128xf32, #tpu.memory_space<any>>
    %94 = tpu.memref_squeeze %93 : memref<1x128x128xf32, #tpu.memory_space<any>> -> memref<128x128xf32, #tpu.memory_space<any>>
    %c0_i32_91 = arith.constant 0 : i32
    %c0_i32_92 = arith.constant 0 : i32
    %95 = tpu.memref_slice %arg5[%c0_i32_87, %c0_i32_91, %c0_i32_92] : memref<2x128x128xf32, #tpu.memory_space<vmem>> -> memref<1x128x128xf32, #tpu.memory_space<vmem>>
    %96 = tpu.memref_squeeze %95 : memref<1x128x128xf32, #tpu.memory_space<vmem>> -> memref<128x128xf32, #tpu.memory_space<vmem>>
    %97 = tpu.memref_slice %arg6[%c0_i32_88] : memref<2x!tpu.dma_semaphore, #tpu.memory_space<semaphore_mem>> -> memref<1x!tpu.dma_semaphore, #tpu.memory_space<semaphore_mem>>
    %98 = tpu.memref_squeeze %97 : memref<1x!tpu.dma_semaphore, #tpu.memory_space<semaphore_mem>> -> memref<!tpu.dma_semaphore, #tpu.memory_space<semaphore_mem>>
    tpu.wait_dma2 semaphore(%98 : memref<!tpu.dma_semaphore, #tpu.memory_space<semaphore_mem>>) src(%94 : memref<128x128xf32, #tpu.memory_space<any>>) dst(%96 : memref<128x128xf32, #tpu.memory_space<vmem>>)
    %c5_i32 = arith.constant 5 : i32
    %c1_i32_93 = arith.constant 1 : i32
    %c1_i32_94 = arith.constant 1 : i32
    %c0_i32_95 = arith.constant 0 : i32
    %c0_i32_96 = arith.constant 0 : i32
    %99 = tpu.memref_slice %arg2[%c5_i32, %c0_i32_95, %c0_i32_96] : memref<11x128x128xf32, #tpu.memory_space<any>> -> memref<1x128x128xf32, #tpu.memory_space<any>>
    %100 = tpu.memref_squeeze %99 : memref<1x128x128xf32, #tpu.memory_space<any>> -> memref<128x128xf32, #tpu.memory_space<any>>
    %c0_i32_97 = arith.constant 0 : i32
    %c0_i32_98 = arith.constant 0 : i32
    %101 = tpu.memref_slice %arg5[%c1_i32_93, %c0_i32_97, %c0_i32_98] : memref<2x128x128xf32, #tpu.memory_space<vmem>> -> memref<1x128x128xf32, #tpu.memory_space<vmem>>
    %102 = tpu.memref_squeeze %101 : memref<1x128x128xf32, #tpu.memory_space<vmem>> -> memref<128x128xf32, #tpu.memory_space<vmem>>
    %103 = tpu.memref_slice %arg6[%c1_i32_94] : memref<2x!tpu.dma_semaphore, #tpu.memory_space<semaphore_mem>> -> memref<1x!tpu.dma_semaphore, #tpu.memory_space<semaphore_mem>>
    %104 = tpu.memref_squeeze %103 : memref<1x!tpu.dma_semaphore, #tpu.memory_space<semaphore_mem>> -> memref<!tpu.dma_semaphore, #tpu.memory_space<semaphore_mem>>
    tpu.enqueue_dma source(%100 : memref<128x128xf32, #tpu.memory_space<any>>) target(%102 : memref<128x128xf32, #tpu.memory_space<vmem>>) target_semaphore(%104 : memref<!tpu.dma_semaphore, #tpu.memory_space<semaphore_mem>>)
    %c0_99 = arith.constant 0 : index
    %c0_100 = arith.constant 0 : index
    %c0_101 = arith.constant 0 : index
    %105 = vector.load %arg5[%c0_99, %c0_100, %c0_101] : memref<2x128x128xf32, #tpu.memory_space<vmem>>, vector<1x128x128xf32>
    %106 = vector.shape_cast %105 : vector<1x128x128xf32> to vector<128x128xf32>
    %cst_102 = arith.constant dense<0.000000e+00> : vector<8x128xf32>
    %107 = tpu.matmul %92, %106, %cst_102 {dimension_numbers = #tpu.dot_dimension_numbers<[1], [0], [0], [1], [0, 0, 1, 1], [], []>} : vector<8x128xf32>, vector<128x128xf32>, vector<8x128xf32> -> vector<8x128xf32>
    %c4 = arith.constant 4 : index
    %c0_103 = arith.constant 0 : index
    %c0_104 = arith.constant 0 : index
    %108 = vector.load %arg3[%c4, %c0_103, %c0_104] : memref<11x1x128xf32, #tpu.memory_space<vmem>>, vector<1x1x128xf32>
    %109 = vector.shape_cast %108 : vector<1x1x128xf32> to vector<1x128xf32>
    %110 = vector.broadcast %109 : vector<1x128xf32> to vector<8x128xf32>
    %111 = arith.addf %107, %110 : vector<8x128xf32>
    %cst_105 = arith.constant 0.000000e+00 : f32
    %112 = vector.broadcast %cst_105 : f32 to vector<8x128xf32>
    %113 = arith.maximumf %111, %112 : vector<8x128xf32>
    %c5_i32_106 = arith.constant 5 : i32
    %c1_i32_107 = arith.constant 1 : i32
    %c1_i32_108 = arith.constant 1 : i32
    %c0_i32_109 = arith.constant 0 : i32
    %c0_i32_110 = arith.constant 0 : i32
    %114 = tpu.memref_slice %arg2[%c5_i32_106, %c0_i32_109, %c0_i32_110] : memref<11x128x128xf32, #tpu.memory_space<any>> -> memref<1x128x128xf32, #tpu.memory_space<any>>
    %115 = tpu.memref_squeeze %114 : memref<1x128x128xf32, #tpu.memory_space<any>> -> memref<128x128xf32, #tpu.memory_space<any>>
    %c0_i32_111 = arith.constant 0 : i32
    %c0_i32_112 = arith.constant 0 : i32
    %116 = tpu.memref_slice %arg5[%c1_i32_107, %c0_i32_111, %c0_i32_112] : memref<2x128x128xf32, #tpu.memory_space<vmem>> -> memref<1x128x128xf32, #tpu.memory_space<vmem>>
    %117 = tpu.memref_squeeze %116 : memref<1x128x128xf32, #tpu.memory_space<vmem>> -> memref<128x128xf32, #tpu.memory_space<vmem>>
    %118 = tpu.memref_slice %arg6[%c1_i32_108] : memref<2x!tpu.dma_semaphore, #tpu.memory_space<semaphore_mem>> -> memref<1x!tpu.dma_semaphore, #tpu.memory_space<semaphore_mem>>
    %119 = tpu.memref_squeeze %118 : memref<1x!tpu.dma_semaphore, #tpu.memory_space<semaphore_mem>> -> memref<!tpu.dma_semaphore, #tpu.memory_space<semaphore_mem>>
    tpu.wait_dma2 semaphore(%119 : memref<!tpu.dma_semaphore, #tpu.memory_space<semaphore_mem>>) src(%115 : memref<128x128xf32, #tpu.memory_space<any>>) dst(%117 : memref<128x128xf32, #tpu.memory_space<vmem>>)
    %c6_i32 = arith.constant 6 : i32
    %c0_i32_113 = arith.constant 0 : i32
    %c0_i32_114 = arith.constant 0 : i32
    %c0_i32_115 = arith.constant 0 : i32
    %c0_i32_116 = arith.constant 0 : i32
    %120 = tpu.memref_slice %arg2[%c6_i32, %c0_i32_115, %c0_i32_116] : memref<11x128x128xf32, #tpu.memory_space<any>> -> memref<1x128x128xf32, #tpu.memory_space<any>>
    %121 = tpu.memref_squeeze %120 : memref<1x128x128xf32, #tpu.memory_space<any>> -> memref<128x128xf32, #tpu.memory_space<any>>
    %c0_i32_117 = arith.constant 0 : i32
    %c0_i32_118 = arith.constant 0 : i32
    %122 = tpu.memref_slice %arg5[%c0_i32_113, %c0_i32_117, %c0_i32_118] : memref<2x128x128xf32, #tpu.memory_space<vmem>> -> memref<1x128x128xf32, #tpu.memory_space<vmem>>
    %123 = tpu.memref_squeeze %122 : memref<1x128x128xf32, #tpu.memory_space<vmem>> -> memref<128x128xf32, #tpu.memory_space<vmem>>
    %124 = tpu.memref_slice %arg6[%c0_i32_114] : memref<2x!tpu.dma_semaphore, #tpu.memory_space<semaphore_mem>> -> memref<1x!tpu.dma_semaphore, #tpu.memory_space<semaphore_mem>>
    %125 = tpu.memref_squeeze %124 : memref<1x!tpu.dma_semaphore, #tpu.memory_space<semaphore_mem>> -> memref<!tpu.dma_semaphore, #tpu.memory_space<semaphore_mem>>
    tpu.enqueue_dma source(%121 : memref<128x128xf32, #tpu.memory_space<any>>) target(%123 : memref<128x128xf32, #tpu.memory_space<vmem>>) target_semaphore(%125 : memref<!tpu.dma_semaphore, #tpu.memory_space<semaphore_mem>>)
    %c1_119 = arith.constant 1 : index
    %c0_120 = arith.constant 0 : index
    %c0_121 = arith.constant 0 : index
    %126 = vector.load %arg5[%c1_119, %c0_120, %c0_121] : memref<2x128x128xf32, #tpu.memory_space<vmem>>, vector<1x128x128xf32>
    %127 = vector.shape_cast %126 : vector<1x128x128xf32> to vector<128x128xf32>
    %cst_122 = arith.constant dense<0.000000e+00> : vector<8x128xf32>
    %128 = tpu.matmul %113, %127, %cst_122 {dimension_numbers = #tpu.dot_dimension_numbers<[1], [0], [0], [1], [0, 0, 1, 1], [], []>} : vector<8x128xf32>, vector<128x128xf32>, vector<8x128xf32> -> vector<8x128xf32>
    %c5 = arith.constant 5 : index
    %c0_123 = arith.constant 0 : index
    %c0_124 = arith.constant 0 : index
    %129 = vector.load %arg3[%c5, %c0_123, %c0_124] : memref<11x1x128xf32, #tpu.memory_space<vmem>>, vector<1x1x128xf32>
    %130 = vector.shape_cast %129 : vector<1x1x128xf32> to vector<1x128xf32>
    %131 = vector.broadcast %130 : vector<1x128xf32> to vector<8x128xf32>
    %132 = arith.addf %128, %131 : vector<8x128xf32>
    %cst_125 = arith.constant 0.000000e+00 : f32
    %133 = vector.broadcast %cst_125 : f32 to vector<8x128xf32>
    %134 = arith.maximumf %132, %133 : vector<8x128xf32>
    %c6_i32_126 = arith.constant 6 : i32
    %c0_i32_127 = arith.constant 0 : i32
    %c0_i32_128 = arith.constant 0 : i32
    %c0_i32_129 = arith.constant 0 : i32
    %c0_i32_130 = arith.constant 0 : i32
    %135 = tpu.memref_slice %arg2[%c6_i32_126, %c0_i32_129, %c0_i32_130] : memref<11x128x128xf32, #tpu.memory_space<any>> -> memref<1x128x128xf32, #tpu.memory_space<any>>
    %136 = tpu.memref_squeeze %135 : memref<1x128x128xf32, #tpu.memory_space<any>> -> memref<128x128xf32, #tpu.memory_space<any>>
    %c0_i32_131 = arith.constant 0 : i32
    %c0_i32_132 = arith.constant 0 : i32
    %137 = tpu.memref_slice %arg5[%c0_i32_127, %c0_i32_131, %c0_i32_132] : memref<2x128x128xf32, #tpu.memory_space<vmem>> -> memref<1x128x128xf32, #tpu.memory_space<vmem>>
    %138 = tpu.memref_squeeze %137 : memref<1x128x128xf32, #tpu.memory_space<vmem>> -> memref<128x128xf32, #tpu.memory_space<vmem>>
    %139 = tpu.memref_slice %arg6[%c0_i32_128] : memref<2x!tpu.dma_semaphore, #tpu.memory_space<semaphore_mem>> -> memref<1x!tpu.dma_semaphore, #tpu.memory_space<semaphore_mem>>
    %140 = tpu.memref_squeeze %139 : memref<1x!tpu.dma_semaphore, #tpu.memory_space<semaphore_mem>> -> memref<!tpu.dma_semaphore, #tpu.memory_space<semaphore_mem>>
    tpu.wait_dma2 semaphore(%140 : memref<!tpu.dma_semaphore, #tpu.memory_space<semaphore_mem>>) src(%136 : memref<128x128xf32, #tpu.memory_space<any>>) dst(%138 : memref<128x128xf32, #tpu.memory_space<vmem>>)
    %c7_i32 = arith.constant 7 : i32
    %c1_i32_133 = arith.constant 1 : i32
    %c1_i32_134 = arith.constant 1 : i32
    %c0_i32_135 = arith.constant 0 : i32
    %c0_i32_136 = arith.constant 0 : i32
    %141 = tpu.memref_slice %arg2[%c7_i32, %c0_i32_135, %c0_i32_136] : memref<11x128x128xf32, #tpu.memory_space<any>> -> memref<1x128x128xf32, #tpu.memory_space<any>>
    %142 = tpu.memref_squeeze %141 : memref<1x128x128xf32, #tpu.memory_space<any>> -> memref<128x128xf32, #tpu.memory_space<any>>
    %c0_i32_137 = arith.constant 0 : i32
    %c0_i32_138 = arith.constant 0 : i32
    %143 = tpu.memref_slice %arg5[%c1_i32_133, %c0_i32_137, %c0_i32_138] : memref<2x128x128xf32, #tpu.memory_space<vmem>> -> memref<1x128x128xf32, #tpu.memory_space<vmem>>
    %144 = tpu.memref_squeeze %143 : memref<1x128x128xf32, #tpu.memory_space<vmem>> -> memref<128x128xf32, #tpu.memory_space<vmem>>
    %145 = tpu.memref_slice %arg6[%c1_i32_134] : memref<2x!tpu.dma_semaphore, #tpu.memory_space<semaphore_mem>> -> memref<1x!tpu.dma_semaphore, #tpu.memory_space<semaphore_mem>>
    %146 = tpu.memref_squeeze %145 : memref<1x!tpu.dma_semaphore, #tpu.memory_space<semaphore_mem>> -> memref<!tpu.dma_semaphore, #tpu.memory_space<semaphore_mem>>
    tpu.enqueue_dma source(%142 : memref<128x128xf32, #tpu.memory_space<any>>) target(%144 : memref<128x128xf32, #tpu.memory_space<vmem>>) target_semaphore(%146 : memref<!tpu.dma_semaphore, #tpu.memory_space<semaphore_mem>>)
    %c0_139 = arith.constant 0 : index
    %c0_140 = arith.constant 0 : index
    %c0_141 = arith.constant 0 : index
    %147 = vector.load %arg5[%c0_139, %c0_140, %c0_141] : memref<2x128x128xf32, #tpu.memory_space<vmem>>, vector<1x128x128xf32>
    %148 = vector.shape_cast %147 : vector<1x128x128xf32> to vector<128x128xf32>
    %cst_142 = arith.constant dense<0.000000e+00> : vector<8x128xf32>
    %149 = tpu.matmul %134, %148, %cst_142 {dimension_numbers = #tpu.dot_dimension_numbers<[1], [0], [0], [1], [0, 0, 1, 1], [], []>} : vector<8x128xf32>, vector<128x128xf32>, vector<8x128xf32> -> vector<8x128xf32>
    %c6 = arith.constant 6 : index
    %c0_143 = arith.constant 0 : index
    %c0_144 = arith.constant 0 : index
    %150 = vector.load %arg3[%c6, %c0_143, %c0_144] : memref<11x1x128xf32, #tpu.memory_space<vmem>>, vector<1x1x128xf32>
    %151 = vector.shape_cast %150 : vector<1x1x128xf32> to vector<1x128xf32>
    %152 = vector.broadcast %151 : vector<1x128xf32> to vector<8x128xf32>
    %153 = arith.addf %149, %152 : vector<8x128xf32>
    %cst_145 = arith.constant 0.000000e+00 : f32
    %154 = vector.broadcast %cst_145 : f32 to vector<8x128xf32>
    %155 = arith.maximumf %153, %154 : vector<8x128xf32>
    %c7_i32_146 = arith.constant 7 : i32
    %c1_i32_147 = arith.constant 1 : i32
    %c1_i32_148 = arith.constant 1 : i32
    %c0_i32_149 = arith.constant 0 : i32
    %c0_i32_150 = arith.constant 0 : i32
    %156 = tpu.memref_slice %arg2[%c7_i32_146, %c0_i32_149, %c0_i32_150] : memref<11x128x128xf32, #tpu.memory_space<any>> -> memref<1x128x128xf32, #tpu.memory_space<any>>
    %157 = tpu.memref_squeeze %156 : memref<1x128x128xf32, #tpu.memory_space<any>> -> memref<128x128xf32, #tpu.memory_space<any>>
    %c0_i32_151 = arith.constant 0 : i32
    %c0_i32_152 = arith.constant 0 : i32
    %158 = tpu.memref_slice %arg5[%c1_i32_147, %c0_i32_151, %c0_i32_152] : memref<2x128x128xf32, #tpu.memory_space<vmem>> -> memref<1x128x128xf32, #tpu.memory_space<vmem>>
    %159 = tpu.memref_squeeze %158 : memref<1x128x128xf32, #tpu.memory_space<vmem>> -> memref<128x128xf32, #tpu.memory_space<vmem>>
    %160 = tpu.memref_slice %arg6[%c1_i32_148] : memref<2x!tpu.dma_semaphore, #tpu.memory_space<semaphore_mem>> -> memref<1x!tpu.dma_semaphore, #tpu.memory_space<semaphore_mem>>
    %161 = tpu.memref_squeeze %160 : memref<1x!tpu.dma_semaphore, #tpu.memory_space<semaphore_mem>> -> memref<!tpu.dma_semaphore, #tpu.memory_space<semaphore_mem>>
    tpu.wait_dma2 semaphore(%161 : memref<!tpu.dma_semaphore, #tpu.memory_space<semaphore_mem>>) src(%157 : memref<128x128xf32, #tpu.memory_space<any>>) dst(%159 : memref<128x128xf32, #tpu.memory_space<vmem>>)
    %c8_i32 = arith.constant 8 : i32
    %c0_i32_153 = arith.constant 0 : i32
    %c0_i32_154 = arith.constant 0 : i32
    %c0_i32_155 = arith.constant 0 : i32
    %c0_i32_156 = arith.constant 0 : i32
    %162 = tpu.memref_slice %arg2[%c8_i32, %c0_i32_155, %c0_i32_156] : memref<11x128x128xf32, #tpu.memory_space<any>> -> memref<1x128x128xf32, #tpu.memory_space<any>>
    %163 = tpu.memref_squeeze %162 : memref<1x128x128xf32, #tpu.memory_space<any>> -> memref<128x128xf32, #tpu.memory_space<any>>
    %c0_i32_157 = arith.constant 0 : i32
    %c0_i32_158 = arith.constant 0 : i32
    %164 = tpu.memref_slice %arg5[%c0_i32_153, %c0_i32_157, %c0_i32_158] : memref<2x128x128xf32, #tpu.memory_space<vmem>> -> memref<1x128x128xf32, #tpu.memory_space<vmem>>
    %165 = tpu.memref_squeeze %164 : memref<1x128x128xf32, #tpu.memory_space<vmem>> -> memref<128x128xf32, #tpu.memory_space<vmem>>
    %166 = tpu.memref_slice %arg6[%c0_i32_154] : memref<2x!tpu.dma_semaphore, #tpu.memory_space<semaphore_mem>> -> memref<1x!tpu.dma_semaphore, #tpu.memory_space<semaphore_mem>>
    %167 = tpu.memref_squeeze %166 : memref<1x!tpu.dma_semaphore, #tpu.memory_space<semaphore_mem>> -> memref<!tpu.dma_semaphore, #tpu.memory_space<semaphore_mem>>
    tpu.enqueue_dma source(%163 : memref<128x128xf32, #tpu.memory_space<any>>) target(%165 : memref<128x128xf32, #tpu.memory_space<vmem>>) target_semaphore(%167 : memref<!tpu.dma_semaphore, #tpu.memory_space<semaphore_mem>>)
    %c1_159 = arith.constant 1 : index
    %c0_160 = arith.constant 0 : index
    %c0_161 = arith.constant 0 : index
    %168 = vector.load %arg5[%c1_159, %c0_160, %c0_161] : memref<2x128x128xf32, #tpu.memory_space<vmem>>, vector<1x128x128xf32>
    %169 = vector.shape_cast %168 : vector<1x128x128xf32> to vector<128x128xf32>
    %cst_162 = arith.constant dense<0.000000e+00> : vector<8x128xf32>
    %170 = tpu.matmul %155, %169, %cst_162 {dimension_numbers = #tpu.dot_dimension_numbers<[1], [0], [0], [1], [0, 0, 1, 1], [], []>} : vector<8x128xf32>, vector<128x128xf32>, vector<8x128xf32> -> vector<8x128xf32>
    %c7 = arith.constant 7 : index
    %c0_163 = arith.constant 0 : index
    %c0_164 = arith.constant 0 : index
    %171 = vector.load %arg3[%c7, %c0_163, %c0_164] : memref<11x1x128xf32, #tpu.memory_space<vmem>>, vector<1x1x128xf32>
    %172 = vector.shape_cast %171 : vector<1x1x128xf32> to vector<1x128xf32>
    %173 = vector.broadcast %172 : vector<1x128xf32> to vector<8x128xf32>
    %174 = arith.addf %170, %173 : vector<8x128xf32>
    %cst_165 = arith.constant 0.000000e+00 : f32
    %175 = vector.broadcast %cst_165 : f32 to vector<8x128xf32>
    %176 = arith.maximumf %174, %175 : vector<8x128xf32>
    %c8_i32_166 = arith.constant 8 : i32
    %c0_i32_167 = arith.constant 0 : i32
    %c0_i32_168 = arith.constant 0 : i32
    %c0_i32_169 = arith.constant 0 : i32
    %c0_i32_170 = arith.constant 0 : i32
    %177 = tpu.memref_slice %arg2[%c8_i32_166, %c0_i32_169, %c0_i32_170] : memref<11x128x128xf32, #tpu.memory_space<any>> -> memref<1x128x128xf32, #tpu.memory_space<any>>
    %178 = tpu.memref_squeeze %177 : memref<1x128x128xf32, #tpu.memory_space<any>> -> memref<128x128xf32, #tpu.memory_space<any>>
    %c0_i32_171 = arith.constant 0 : i32
    %c0_i32_172 = arith.constant 0 : i32
    %179 = tpu.memref_slice %arg5[%c0_i32_167, %c0_i32_171, %c0_i32_172] : memref<2x128x128xf32, #tpu.memory_space<vmem>> -> memref<1x128x128xf32, #tpu.memory_space<vmem>>
    %180 = tpu.memref_squeeze %179 : memref<1x128x128xf32, #tpu.memory_space<vmem>> -> memref<128x128xf32, #tpu.memory_space<vmem>>
    %181 = tpu.memref_slice %arg6[%c0_i32_168] : memref<2x!tpu.dma_semaphore, #tpu.memory_space<semaphore_mem>> -> memref<1x!tpu.dma_semaphore, #tpu.memory_space<semaphore_mem>>
    %182 = tpu.memref_squeeze %181 : memref<1x!tpu.dma_semaphore, #tpu.memory_space<semaphore_mem>> -> memref<!tpu.dma_semaphore, #tpu.memory_space<semaphore_mem>>
    tpu.wait_dma2 semaphore(%182 : memref<!tpu.dma_semaphore, #tpu.memory_space<semaphore_mem>>) src(%178 : memref<128x128xf32, #tpu.memory_space<any>>) dst(%180 : memref<128x128xf32, #tpu.memory_space<vmem>>)
    %c9_i32 = arith.constant 9 : i32
    %c1_i32_173 = arith.constant 1 : i32
    %c1_i32_174 = arith.constant 1 : i32
    %c0_i32_175 = arith.constant 0 : i32
    %c0_i32_176 = arith.constant 0 : i32
    %183 = tpu.memref_slice %arg2[%c9_i32, %c0_i32_175, %c0_i32_176] : memref<11x128x128xf32, #tpu.memory_space<any>> -> memref<1x128x128xf32, #tpu.memory_space<any>>
    %184 = tpu.memref_squeeze %183 : memref<1x128x128xf32, #tpu.memory_space<any>> -> memref<128x128xf32, #tpu.memory_space<any>>
    %c0_i32_177 = arith.constant 0 : i32
    %c0_i32_178 = arith.constant 0 : i32
    %185 = tpu.memref_slice %arg5[%c1_i32_173, %c0_i32_177, %c0_i32_178] : memref<2x128x128xf32, #tpu.memory_space<vmem>> -> memref<1x128x128xf32, #tpu.memory_space<vmem>>
    %186 = tpu.memref_squeeze %185 : memref<1x128x128xf32, #tpu.memory_space<vmem>> -> memref<128x128xf32, #tpu.memory_space<vmem>>
    %187 = tpu.memref_slice %arg6[%c1_i32_174] : memref<2x!tpu.dma_semaphore, #tpu.memory_space<semaphore_mem>> -> memref<1x!tpu.dma_semaphore, #tpu.memory_space<semaphore_mem>>
    %188 = tpu.memref_squeeze %187 : memref<1x!tpu.dma_semaphore, #tpu.memory_space<semaphore_mem>> -> memref<!tpu.dma_semaphore, #tpu.memory_space<semaphore_mem>>
    tpu.enqueue_dma source(%184 : memref<128x128xf32, #tpu.memory_space<any>>) target(%186 : memref<128x128xf32, #tpu.memory_space<vmem>>) target_semaphore(%188 : memref<!tpu.dma_semaphore, #tpu.memory_space<semaphore_mem>>)
    %c0_179 = arith.constant 0 : index
    %c0_180 = arith.constant 0 : index
    %c0_181 = arith.constant 0 : index
    %189 = vector.load %arg5[%c0_179, %c0_180, %c0_181] : memref<2x128x128xf32, #tpu.memory_space<vmem>>, vector<1x128x128xf32>
    %190 = vector.shape_cast %189 : vector<1x128x128xf32> to vector<128x128xf32>
    %cst_182 = arith.constant dense<0.000000e+00> : vector<8x128xf32>
    %191 = tpu.matmul %176, %190, %cst_182 {dimension_numbers = #tpu.dot_dimension_numbers<[1], [0], [0], [1], [0, 0, 1, 1], [], []>} : vector<8x128xf32>, vector<128x128xf32>, vector<8x128xf32> -> vector<8x128xf32>
    %c8 = arith.constant 8 : index
    %c0_183 = arith.constant 0 : index
    %c0_184 = arith.constant 0 : index
    %192 = vector.load %arg3[%c8, %c0_183, %c0_184] : memref<11x1x128xf32, #tpu.memory_space<vmem>>, vector<1x1x128xf32>
    %193 = vector.shape_cast %192 : vector<1x1x128xf32> to vector<1x128xf32>
    %194 = vector.broadcast %193 : vector<1x128xf32> to vector<8x128xf32>
    %195 = arith.addf %191, %194 : vector<8x128xf32>
    %cst_185 = arith.constant 0.000000e+00 : f32
    %196 = vector.broadcast %cst_185 : f32 to vector<8x128xf32>
    %197 = arith.maximumf %195, %196 : vector<8x128xf32>
    %c9_i32_186 = arith.constant 9 : i32
    %c1_i32_187 = arith.constant 1 : i32
    %c1_i32_188 = arith.constant 1 : i32
    %c0_i32_189 = arith.constant 0 : i32
    %c0_i32_190 = arith.constant 0 : i32
    %198 = tpu.memref_slice %arg2[%c9_i32_186, %c0_i32_189, %c0_i32_190] : memref<11x128x128xf32, #tpu.memory_space<any>> -> memref<1x128x128xf32, #tpu.memory_space<any>>
    %199 = tpu.memref_squeeze %198 : memref<1x128x128xf32, #tpu.memory_space<any>> -> memref<128x128xf32, #tpu.memory_space<any>>
    %c0_i32_191 = arith.constant 0 : i32
    %c0_i32_192 = arith.constant 0 : i32
    %200 = tpu.memref_slice %arg5[%c1_i32_187, %c0_i32_191, %c0_i32_192] : memref<2x128x128xf32, #tpu.memory_space<vmem>> -> memref<1x128x128xf32, #tpu.memory_space<vmem>>
    %201 = tpu.memref_squeeze %200 : memref<1x128x128xf32, #tpu.memory_space<vmem>> -> memref<128x128xf32, #tpu.memory_space<vmem>>
    %202 = tpu.memref_slice %arg6[%c1_i32_188] : memref<2x!tpu.dma_semaphore, #tpu.memory_space<semaphore_mem>> -> memref<1x!tpu.dma_semaphore, #tpu.memory_space<semaphore_mem>>
    %203 = tpu.memref_squeeze %202 : memref<1x!tpu.dma_semaphore, #tpu.memory_space<semaphore_mem>> -> memref<!tpu.dma_semaphore, #tpu.memory_space<semaphore_mem>>
    tpu.wait_dma2 semaphore(%203 : memref<!tpu.dma_semaphore, #tpu.memory_space<semaphore_mem>>) src(%199 : memref<128x128xf32, #tpu.memory_space<any>>) dst(%201 : memref<128x128xf32, #tpu.memory_space<vmem>>)
    %c10_i32 = arith.constant 10 : i32
    %c0_i32_193 = arith.constant 0 : i32
    %c0_i32_194 = arith.constant 0 : i32
    %c0_i32_195 = arith.constant 0 : i32
    %c0_i32_196 = arith.constant 0 : i32
    %204 = tpu.memref_slice %arg2[%c10_i32, %c0_i32_195, %c0_i32_196] : memref<11x128x128xf32, #tpu.memory_space<any>> -> memref<1x128x128xf32, #tpu.memory_space<any>>
    %205 = tpu.memref_squeeze %204 : memref<1x128x128xf32, #tpu.memory_space<any>> -> memref<128x128xf32, #tpu.memory_space<any>>
    %c0_i32_197 = arith.constant 0 : i32
    %c0_i32_198 = arith.constant 0 : i32
    %206 = tpu.memref_slice %arg5[%c0_i32_193, %c0_i32_197, %c0_i32_198] : memref<2x128x128xf32, #tpu.memory_space<vmem>> -> memref<1x128x128xf32, #tpu.memory_space<vmem>>
    %207 = tpu.memref_squeeze %206 : memref<1x128x128xf32, #tpu.memory_space<vmem>> -> memref<128x128xf32, #tpu.memory_space<vmem>>
    %208 = tpu.memref_slice %arg6[%c0_i32_194] : memref<2x!tpu.dma_semaphore, #tpu.memory_space<semaphore_mem>> -> memref<1x!tpu.dma_semaphore, #tpu.memory_space<semaphore_mem>>
    %209 = tpu.memref_squeeze %208 : memref<1x!tpu.dma_semaphore, #tpu.memory_space<semaphore_mem>> -> memref<!tpu.dma_semaphore, #tpu.memory_space<semaphore_mem>>
    tpu.enqueue_dma source(%205 : memref<128x128xf32, #tpu.memory_space<any>>) target(%207 : memref<128x128xf32, #tpu.memory_space<vmem>>) target_semaphore(%209 : memref<!tpu.dma_semaphore, #tpu.memory_space<semaphore_mem>>)
    %c1_199 = arith.constant 1 : index
    %c0_200 = arith.constant 0 : index
    %c0_201 = arith.constant 0 : index
    %210 = vector.load %arg5[%c1_199, %c0_200, %c0_201] : memref<2x128x128xf32, #tpu.memory_space<vmem>>, vector<1x128x128xf32>
    %211 = vector.shape_cast %210 : vector<1x128x128xf32> to vector<128x128xf32>
    %cst_202 = arith.constant dense<0.000000e+00> : vector<8x128xf32>
    %212 = tpu.matmul %197, %211, %cst_202 {dimension_numbers = #tpu.dot_dimension_numbers<[1], [0], [0], [1], [0, 0, 1, 1], [], []>} : vector<8x128xf32>, vector<128x128xf32>, vector<8x128xf32> -> vector<8x128xf32>
    %c9 = arith.constant 9 : index
    %c0_203 = arith.constant 0 : index
    %c0_204 = arith.constant 0 : index
    %213 = vector.load %arg3[%c9, %c0_203, %c0_204] : memref<11x1x128xf32, #tpu.memory_space<vmem>>, vector<1x1x128xf32>
    %214 = vector.shape_cast %213 : vector<1x1x128xf32> to vector<1x128xf32>
    %215 = vector.broadcast %214 : vector<1x128xf32> to vector<8x128xf32>
    %216 = arith.addf %212, %215 : vector<8x128xf32>
    %cst_205 = arith.constant 0.000000e+00 : f32
    %217 = vector.broadcast %cst_205 : f32 to vector<8x128xf32>
    %218 = arith.maximumf %216, %217 : vector<8x128xf32>
    %c10_i32_206 = arith.constant 10 : i32
    %c0_i32_207 = arith.constant 0 : i32
    %c0_i32_208 = arith.constant 0 : i32
    %c0_i32_209 = arith.constant 0 : i32
    %c0_i32_210 = arith.constant 0 : i32
    %219 = tpu.memref_slice %arg2[%c10_i32_206, %c0_i32_209, %c0_i32_210] : memref<11x128x128xf32, #tpu.memory_space<any>> -> memref<1x128x128xf32, #tpu.memory_space<any>>
    %220 = tpu.memref_squeeze %219 : memref<1x128x128xf32, #tpu.memory_space<any>> -> memref<128x128xf32, #tpu.memory_space<any>>
    %c0_i32_211 = arith.constant 0 : i32
    %c0_i32_212 = arith.constant 0 : i32
    %221 = tpu.memref_slice %arg5[%c0_i32_207, %c0_i32_211, %c0_i32_212] : memref<2x128x128xf32, #tpu.memory_space<vmem>> -> memref<1x128x128xf32, #tpu.memory_space<vmem>>
    %222 = tpu.memref_squeeze %221 : memref<1x128x128xf32, #tpu.memory_space<vmem>> -> memref<128x128xf32, #tpu.memory_space<vmem>>
    %223 = tpu.memref_slice %arg6[%c0_i32_208] : memref<2x!tpu.dma_semaphore, #tpu.memory_space<semaphore_mem>> -> memref<1x!tpu.dma_semaphore, #tpu.memory_space<semaphore_mem>>
    %224 = tpu.memref_squeeze %223 : memref<1x!tpu.dma_semaphore, #tpu.memory_space<semaphore_mem>> -> memref<!tpu.dma_semaphore, #tpu.memory_space<semaphore_mem>>
    tpu.wait_dma2 semaphore(%224 : memref<!tpu.dma_semaphore, #tpu.memory_space<semaphore_mem>>) src(%220 : memref<128x128xf32, #tpu.memory_space<any>>) dst(%222 : memref<128x128xf32, #tpu.memory_space<vmem>>)
    %c0_213 = arith.constant 0 : index
    %c0_214 = arith.constant 0 : index
    %c0_215 = arith.constant 0 : index
    %225 = vector.load %arg5[%c0_213, %c0_214, %c0_215] : memref<2x128x128xf32, #tpu.memory_space<vmem>>, vector<1x128x128xf32>
    %226 = vector.shape_cast %225 : vector<1x128x128xf32> to vector<128x128xf32>
    %cst_216 = arith.constant dense<0.000000e+00> : vector<8x128xf32>
    %227 = tpu.matmul %218, %226, %cst_216 {dimension_numbers = #tpu.dot_dimension_numbers<[1], [0], [0], [1], [0, 0, 1, 1], [], []>} : vector<8x128xf32>, vector<128x128xf32>, vector<8x128xf32> -> vector<8x128xf32>
    %c10 = arith.constant 10 : index
    %c0_217 = arith.constant 0 : index
    %c0_218 = arith.constant 0 : index
    %228 = vector.load %arg3[%c10, %c0_217, %c0_218] : memref<11x1x128xf32, #tpu.memory_space<vmem>>, vector<1x1x128xf32>
    %229 = vector.shape_cast %228 : vector<1x1x128xf32> to vector<1x128xf32>
    %230 = vector.broadcast %229 : vector<1x128xf32> to vector<8x128xf32>
    %231 = arith.addf %227, %230 : vector<8x128xf32>
    %232 = vector.extract_strided_slice %231 {offsets = [0, 0], sizes = [8, 16], strides = [1, 1]} : vector<8x128xf32> to vector<8x16xf32>
    %233 = vector.extract_strided_slice %232 {offsets = [0, 0], sizes = [8, 8], strides = [1, 1]} : vector<8x16xf32> to vector<8x8xf32>
    %234 = vector.extract_strided_slice %232 {offsets = [0, 8], sizes = [8, 8], strides = [1, 1]} : vector<8x16xf32> to vector<8x8xf32>
    %235 = arith.maximumf %233, %234 : vector<8x8xf32>
    %236 = vector.extract_strided_slice %235 {offsets = [0, 0], sizes = [8, 4], strides = [1, 1]} : vector<8x8xf32> to vector<8x4xf32>
    %237 = vector.extract_strided_slice %235 {offsets = [0, 4], sizes = [8, 4], strides = [1, 1]} : vector<8x8xf32> to vector<8x4xf32>
    %238 = arith.maximumf %236, %237 : vector<8x4xf32>
    %239 = tpu.concatenate %238, %238, %238, %238 in 1 : vector<8x4xf32>, vector<8x4xf32>, vector<8x4xf32>, vector<8x4xf32> -> vector<8x16xf32>
    %240 = arith.subf %232, %239 : vector<8x16xf32>
    %241 = math.exp %240 : vector<8x16xf32>
    %242 = vector.extract_strided_slice %241 {offsets = [0, 0], sizes = [8, 8], strides = [1, 1]} : vector<8x16xf32> to vector<8x8xf32>
    %243 = vector.extract_strided_slice %241 {offsets = [0, 8], sizes = [8, 8], strides = [1, 1]} : vector<8x16xf32> to vector<8x8xf32>
    %244 = arith.addf %242, %243 : vector<8x8xf32>
    %245 = vector.extract_strided_slice %244 {offsets = [0, 0], sizes = [8, 4], strides = [1, 1]} : vector<8x8xf32> to vector<8x4xf32>
    %246 = vector.extract_strided_slice %244 {offsets = [0, 4], sizes = [8, 4], strides = [1, 1]} : vector<8x8xf32> to vector<8x4xf32>
    %247 = arith.addf %245, %246 : vector<8x4xf32>
    %248 = tpu.reciprocal %247 : vector<8x4xf32> -> vector<8x4xf32>
    %249 = tpu.concatenate %248, %248, %248, %248 in 1 : vector<8x4xf32>, vector<8x4xf32>, vector<8x4xf32>, vector<8x4xf32> -> vector<8x16xf32>
    %250 = arith.mulf %241, %249 : vector<8x16xf32>
    %251 = tpu.iota {dimensions = array<i32: 1>} : vector<8x16xi32>
    %252 = tpu.iota {dimensions = array<i32: 1>} : vector<8x4xi32>
    %253 = tpu.concatenate %252, %252, %252, %252 in 1 : vector<8x4xi32>, vector<8x4xi32>, vector<8x4xi32>, vector<8x4xi32> -> vector<8x16xi32>
    %c5_i32_219 = arith.constant 5 : i32
    %254 = vector.broadcast %c5_i32_219 : i32 to vector<8x16xi32>
    %255 = arith.muli %253, %254 : vector<8x16xi32>
    %256 = arith.cmpi eq, %251, %255 : vector<8x16xi32>
    %257 = arith.extui %256 : vector<8x16xi1> to vector<8x16xi32>
    %258 = arith.sitofp %257 : vector<8x16xi32> to vector<8x16xf32>
    %259 = arith.addf %258, %250 : vector<8x16xf32>
    %cst_220 = arith.constant 5.000000e-01 : f32
    %260 = vector.broadcast %cst_220 : f32 to vector<8x16xf32>
    %261 = arith.mulf %260, %259 : vector<8x16xf32>
    %262 = vector.extract_strided_slice %231 {offsets = [0, 16], sizes = [8, 112], strides = [1, 1]} : vector<8x128xf32> to vector<8x112xf32>
    %263 = tpu.concatenate %261, %262 in 1 : vector<8x16xf32>, vector<8x112xf32> -> vector<8x128xf32>
    %c0_221 = arith.constant 0 : index
    %c0_222 = arith.constant 0 : index
    %264 = vector.load %arg4[%c0_221, %c0_222] : memref<8x128xf32, #tpu.memory_space<vmem>>, vector<8x128xf32>
    tpu.vector_store %arg4[%c0_221, %c0_222], %263 {strides = array<i32>} : memref<8x128xf32, #tpu.memory_space<vmem>>, vector<8x128xf32>,
    return
  }
  func.func @transform_0(%arg0: i32) -> (i32, i32) {
    %c0_i32 = arith.constant 0 : i32
    %c0_i32_0 = arith.constant 0 : i32
    return %arg0, %c0_i32 : i32, i32
  }
  func.func @transform_2(%arg0: i32) -> (i32, i32, i32) {
    %c0_i32 = arith.constant 0 : i32
    %c0_i32_0 = arith.constant 0 : i32
    %c0_i32_1 = arith.constant 0 : i32
    %c0_i32_2 = arith.constant 0 : i32
    return %c0_i32, %c0_i32_0, %c0_i32_1 : i32, i32, i32
  }
  func.func @transform_3(%arg0: i32) -> (i32, i32) {
    %c0_i32 = arith.constant 0 : i32
    %c0_i32_0 = arith.constant 0 : i32
    return %arg0, %c0_i32 : i32, i32
  }
}

</mosaic_0001>

<bundles_post_ra>
// kernel: tpu_custom_call.1
= control target key start
LH: loop header
LB: loop body
LE: loop exit
PB: predicated region body
PF: predicated region fallthrough
CT: control target
= control target key end

     0   :  { %8 = vsyncpa [#allocation5], 0  ;;  %s2095_s17 = smov [#allocation2]   ;;  %s2096_s19 = smov [#allocation2 + $0x80]   ;;  %s2457_s0 = inlined_call_operand.vmem [shape: f32[8,1], index: 0, kind: input, shape index: {}]   ;;  %s2458_s1 = inlined_call_operand.hbm [shape: f32[11,128,128], index: 1, kind: input, shape index: {}]   ;;  %s2459_s2 = inlined_call_operand.vmem [shape: f32[11,1,128], index: 2, kind: input, shape index: {}]   ;;  %s2460_s3 = inlined_call_operand.hbm [shape: f32[8,128], index: 3, kind: output, shape index: {}]  }
   0x1   :  { %s24_s14 = scalar_lea.hbm %s2458_s1, 2048  ;;  %v38_v0 = vld [vmem:[%s2457_s0] sm:$0xff]  ;;  %s20_s18 = sshll.u32 %s2095_s17, 4  ;;  %s2132_s18 = int_to_ptr.vmem [resolvable:$true] %s20_s18 }
   0x2   :  { %s34_s20 = sshll.u32 %s2096_s19, 4  ;;  %s1809_s21 = scalar_lea.vmem %s2132_s18, 2048  ;;  %s2149_s20 = int_to_ptr.vmem [resolvable:$true] %s34_s20 }
   0x3   :  { %p1810_p0 = scmp.ne.s32.totalorder %s2132_s18, %s1809_s21  ;;  %s1813_s22 = scalar_lea.vmem %s2132_s18, 4096 }
   0x4   :  { %p1814_p1 = scmp.lt.s32.totalorder %s2132_s18, %s2132_s18  ;;  %p1815_p2 = scmp.lt.s32.totalorder %s1813_s22, %s1809_s21 }
   0x6   :  { %p1816_p3 = por %p1815_p2, %p1814_p1 }
   0x8   :  { %p2139_p4 = pnand %p1816_p3, %p1810_p0 }
   0xa   :  { %1820 = shalt.err (!%p2139_p4)  }
   0xb   :  { %23 = dma.hbm_to_vmem [thread:$0]  %s2458_s1, 2048, %s2132_s18, [#allocation3] }
   0xc   :  { %s1831_s25 = scalar_lea.vmem %s2149_s20, 2048  ;;  %p1836_p6 = scmp.lt.s32.totalorder %s2149_s20, %s2132_s18 }
   0xd   :  { %p1832_p5 = scmp.ne.s32.totalorder %s2149_s20, %s1831_s25  ;;  %p1837_p7 = scmp.lt.s32.totalorder %s1813_s22, %s1831_s25 }
   0xf   :  { %p1838_p8 = por %p1837_p7, %p1836_p6 }
  0x11   :  { %p2155_p9 = pnand %p1838_p8, %p1832_p5 }
  0x13   :  { %1842 = shalt.err (!%p2155_p9)  }
  0x14   :  { %37 = dma.hbm_to_vmem [thread:$0]  %s24_s14, 2048, %s2149_s20, [#allocation3 + $0x1] }
  0x15   :  { %2071 = dma.done.wait [#allocation3], 2048 }
  0x16   :  { %2072 = vsyncadd [#allocation3], 4294965248  ;;  %v2097_v1 = vmov 0   ;;  %v1240_v2 = vld [vmem:[#allocation2] ss:$0 sm:$0xff] }
  0x17   :  { %1796 = vset.pattern.permute.xlu0 %v2097_v1  ;;  %v1241_v4 = vld [vmem:[%s2459_s2] ss:$0 sm:$0xff] }
  0x18   :  { %45 = vperm.xlu0 %1796, %v38_v0  }
  0x93   :  { %v46_v3 = vpop.permute.xlu0 %45 }
  0x94   :  { %v52_v5 = vmul.f32 %v1240_v2, %v46_v3 }
  0x96   :  { %v60_v6 = vadd.f32 %v1241_v4, %v52_v5 }
  0x98   :  { %v61_v7 = vmax.f32 %v60_v6, 0.0 }
  0x99   :  { %2073 = dma.done.wait [#allocation3 + $0x1], 2048 }
  0x9a   :  { %2074 = vsyncadd [#allocation3 + $0x1], 4294965248  ;;  %s64_s4 = scalar_lea.hbm %s2458_s1, 4096 }
  0x9b   :  { %1865 = shalt.err (!%p2139_p4)  }
  0x9c   :  { %75 = dma.hbm_to_vmem [thread:$0]  %s64_s4, 2048, %s2132_s18, [#allocation3]  ;;  %v2098_v8 = vmov 0.0   ;;  %vm2099_vm0 = vmmov 0   ;;  %v1243_v25 = vld [vmem:[%s2459_s2 + $0x1] ss:$0 sm:$0xff] }
  0x9d   :  { %1435 = vmatprep.subr.mxu0 %v2098_v8  ;;  %1467 = vmatprep.mubr.msk.f32.mxu0 %vm2099_vm0, %v2098_v8  ;;  %v91_v9 = vld [vmem:[#allocation2 + $0xf8] sm:$0xff]  ;;  %v90_v10 = vld [vmem:[#allocation2 + $0xf0] sm:$0xff]  ;;  %v89_v11 = vld [vmem:[#allocation2 + $0xe8] sm:$0xff] }
  0x9e   :  { %1436 = vmatpush3.msra.mxu0 %v91_v9  ;;  %v88_v12 = vld [vmem:[#allocation2 + $0xe0] sm:$0xff]  ;;  %v87_v13 = vld [vmem:[#allocation2 + $0xd8] sm:$0xff]  ;;  %v86_v14 = vld [vmem:[#allocation2 + $0xd0] sm:$0xff] }
  0x9f   :  { %1437 = vmatprep.subr.mxu0 %v2098_v8  ;;  %v85_v15 = vld [vmem:[#allocation2 + $0xc8] sm:$0xff]  ;;  %v84_v16 = vld [vmem:[#allocation2 + $0xc0] sm:$0xff]  ;;  %v83_v17 = vld [vmem:[#allocation2 + $0xb8] sm:$0xff] }
  0xa0   :  { %1438 = vmatpush3.msra.mxu0 %v90_v10  ;;  %v82_v18 = vld [vmem:[#allocation2 + $0xb0] sm:$0xff]  ;;  %v81_v19 = vld [vmem:[#allocation2 + $0xa8] sm:$0xff]  ;;  %v80_v20 = vld [vmem:[#allocation2 + $0xa0] sm:$0xff] }
  0xa1   :  { %1439 = vmatprep.subr.mxu0 %v2098_v8  ;;  %v79_v21 = vld [vmem:[#allocation2 + $0x98] sm:$0xff]  ;;  %v78_v22 = vld [vmem:[#allocation2 + $0x90] sm:$0xff]  ;;  %v77_v23 = vld [vmem:[#allocation2 + $0x88] sm:$0xff] }
  0xa2   :  { %1440 = vmatpush3.msra.mxu0 %v89_v11  ;;  %v76_v24 = vld [vmem:[#allocation2 + $0x80] sm:$0xff] }
  0xa3   :  { %1441 = vmatprep.subr.mxu0 %v2098_v8 }
  0xa4   :  { %1442 = vmatpush3.msra.mxu0 %v88_v12 }
  0xa5   :  { %1443 = vmatprep.subr.mxu0 %v2098_v8 }
  0xa6   :  { %1444 = vmatpush3.msra.mxu0 %v87_v13 }
  0xa7   :  { %1445 = vmatprep.subr.mxu0 %v2098_v8 }
  0xa8   :  { %1446 = vmatpush3.msra.mxu0 %v86_v14 }
  0xa9   :  { %1447 = vmatprep.subr.mxu0 %v2098_v8 }
  0xaa   :  { %1448 = vmatpush3.msra.mxu0 %v85_v15 }
  0xab   :  { %1449 = vmatprep.subr.mxu0 %v2098_v8 }
  0xac   :  { %1450 = vmatpush3.msra.mxu0 %v84_v16 }
  0xad   :  { %1451 = vmatprep.subr.mxu0 %v2098_v8 }
  0xae   :  { %1452 = vmatpush3.msra.mxu0 %v83_v17 }
  0xaf   :  { %1453 = vmatprep.subr.mxu0 %v2098_v8 }
  0xb0   :  { %1454 = vmatpush3.msra.mxu0 %v82_v18 }
  0xb1   :  { %1455 = vmatprep.subr.mxu0 %v2098_v8 }
  0xb2   :  { %1456 = vmatpush3.msra.mxu0 %v81_v19 }
  0xb3   :  { %1457 = vmatprep.subr.mxu0 %v2098_v8 }
  0xb4   :  { %1458 = vmatpush3.msra.mxu0 %v80_v20 }
  0xb5   :  { %1459 = vmatprep.subr.mxu0 %v2098_v8 }
  0xb6   :  { %1460 = vmatpush3.msra.mxu0 %v79_v21 }
  0xb7   :  { %1461 = vmatprep.subr.mxu0 %v2098_v8 }
  0xb8   :  { %1462 = vmatpush3.msra.mxu0 %v78_v22 }
  0xb9   :  { %1463 = vmatprep.subr.mxu0 %v2098_v8 }
  0xba   :  { %1464 = vmatpush3.msra.mxu0 %v77_v23 }
  0xbb   :  { %1465 = vmatprep.subr.mxu0 %v2098_v8 }
  0xbc   :  { %1466 = vmatpush3.msra.mxu0 %v76_v24 }
  0xbd   :  { %1468 = vmatmul.mubr.f32.vlgmr.msra.gmra.mxu0 %v61_v7 }
 0x17d   :  { %v166_v26 = vpop.f32.mrf.mxu0 }
 0x17e   :  { %v167_v27 = vadd.f32 %v1243_v25, %v166_v26 }
 0x17f   :  { %v1469_v28 = vpop.f32.mrf.mxu0 }
 0x180   :  { %v170_v29 = vmax.f32 %v167_v27, 0.0 }
 0x181   :  { %2075 = dma.done.wait [#allocation3], 2048 }
 0x182   :  { %2076 = vsyncadd [#allocation3], 4294965248  ;;  %s173_s9 = scalar_lea.hbm %s2458_s1, 6144  ;;  %1470 = vmatprep.subr.mxu1 %v2098_v8  ;;  %1502 = vmatprep.mubr.msk.f32.mxu1 %vm2099_vm0, %v2098_v8 }
 0x183   :  { %1888 = shalt.err (!%p2155_p9)  }
 0x184   :  { %184 = dma.hbm_to_vmem [thread:$0]  %s173_s9, 2048, %s2149_s20, [#allocation3 + $0x1]  ;;  %v1245_v46 = vld [vmem:[%s2459_s2 + $0x2] ss:$0 sm:$0xff] }
 0x185   :  { %v200_v30 = vld [vmem:[#allocation2 + $0x78] sm:$0xff]  ;;  %v199_v31 = vld [vmem:[#allocation2 + $0x70] sm:$0xff]  ;;  %v198_v32 = vld [vmem:[#allocation2 + $0x68] sm:$0xff] }
 0x186   :  { %1471 = vmatpush3.msra.mxu1 %v200_v30  ;;  %v197_v33 = vld [vmem:[#allocation2 + $0x60] sm:$0xff]  ;;  %v196_v34 = vld [vmem:[#allocation2 + $0x58] sm:$0xff]  ;;  %v195_v35 = vld [vmem:[#allocation2 + $0x50] sm:$0xff] }
 0x187   :  { %1472 = vmatprep.subr.mxu1 %v2098_v8  ;;  %v194_v36 = vld [vmem:[#allocation2 + $0x48] sm:$0xff]  ;;  %v193_v37 = vld [vmem:[#allocation2 + $0x40] sm:$0xff]  ;;  %v192_v38 = vld [vmem:[#allocation2 + $0x38] sm:$0xff] }
 0x188   :  { %1473 = vmatpush3.msra.mxu1 %v199_v31  ;;  %v191_v39 = vld [vmem:[#allocation2 + $0x30] sm:$0xff]  ;;  %v190_v40 = vld [vmem:[#allocation2 + $0x28] sm:$0xff]  ;;  %v189_v41 = vld [vmem:[#allocation2 + $0x20] sm:$0xff] }
 0x189   :  { %1474 = vmatprep.subr.mxu1 %v2098_v8  ;;  %v188_v42 = vld [vmem:[#allocation2 + $0x18] sm:$0xff]  ;;  %v187_v43 = vld [vmem:[#allocation2 + $0x10] sm:$0xff]  ;;  %v186_v44 = vld [vmem:[#allocation2 + $0x8] sm:$0xff] }
 0x18a   :  { %1475 = vmatpush3.msra.mxu1 %v198_v32  ;;  %v185_v45 = vld [vmem:[#allocation2] sm:$0xff] }
 0x18b   :  { %1476 = vmatprep.subr.mxu1 %v2098_v8 }
 0x18c   :  { %1477 = vmatpush3.msra.mxu1 %v197_v33 }
 0x18d   :  { %1478 = vmatprep.subr.mxu1 %v2098_v8 }
 0x18e   :  { %1479 = vmatpush3.msra.mxu1 %v196_v34 }
 0x18f   :  { %1480 = vmatprep.subr.mxu1 %v2098_v8 }
 0x190   :  { %1481 = vmatpush3.msra.mxu1 %v195_v35 }
 0x191   :  { %1482 = vmatprep.subr.mxu1 %v2098_v8 }
 0x192   :  { %1483 = vmatpush3.msra.mxu1 %v194_v36 }
 0x193   :  { %1484 = vmatprep.subr.mxu1 %v2098_v8 }
 0x194   :  { %1485 = vmatpush3.msra.mxu1 %v193_v37 }
 0x195   :  { %1486 = vmatprep.subr.mxu1 %v2098_v8 }
 0x196   :  { %1487 = vmatpush3.msra.mxu1 %v192_v38 }
 0x197   :  { %1488 = vmatprep.subr.mxu1 %v2098_v8 }
 0x198   :  { %1489 = vmatpush3.msra.mxu1 %v191_v39 }
 0x199   :  { %1490 = vmatprep.subr.mxu1 %v2098_v8 }
 0x19a   :  { %1491 = vmatpush3.msra.mxu1 %v190_v40 }
 0x19b   :  { %1492 = vmatprep.subr.mxu1 %v2098_v8 }
 0x19c   :  { %1493 = vmatpush3.msra.mxu1 %v189_v41 }
 0x19d   :  { %1494 = vmatprep.subr.mxu1 %v2098_v8 }
 0x19e   :  { %1495 = vmatpush3.msra.mxu1 %v188_v42 }
 0x19f   :  { %1496 = vmatprep.subr.mxu1 %v2098_v8 }
 0x1a0   :  { %1497 = vmatpush3.msra.mxu1 %v187_v43 }
 0x1a1   :  { %1498 = vmatprep.subr.mxu1 %v2098_v8 }
 0x1a2   :  { %1499 = vmatpush3.msra.mxu1 %v186_v44 }
 0x1a3   :  { %1500 = vmatprep.subr.mxu1 %v2098_v8 }
 0x1a4   :  { %1501 = vmatpush3.msra.mxu1 %v185_v45 }
 0x1a5   :  { %1503 = vmatmul.mubr.f32.vlgmr.msra.gmra.mxu1 %v170_v29 }
 0x265   :  { %v275_v47 = vpop.f32.mrf.mxu1 }
 0x266   :  { %v276_v48 = vadd.f32 %v1245_v46, %v275_v47 }
 0x267   :  { %v1504_v49 = vpop.f32.mrf.mxu1 }
 0x268   :  { %v279_v50 = vmax.f32 %v276_v48, 0.0 }
 0x269   :  { %2077 = dma.done.wait [#allocation3 + $0x1], 2048 }
 0x26a   :  { %2078 = vsyncadd [#allocation3 + $0x1], 4294965248  ;;  %s282_s14 = scalar_lea.hbm %s2458_s1, 8192  ;;  %1505 = vmatprep.subr.mxu0 %v2098_v8  ;;  %1537 = vmatprep.mubr.msk.f32.mxu0 %vm2099_vm0, %v2098_v8 }
 0x26b   :  { %1911 = shalt.err (!%p2139_p4)  }
 0x26c   :  { %293 = dma.hbm_to_vmem [thread:$0]  %s282_s14, 2048, %s2132_s18, [#allocation3]  ;;  %v1247_v3 = vld [vmem:[%s2459_s2 + $0x3] ss:$0 sm:$0xff] }
 0x26d   :  { %v309_v51 = vld [vmem:[#allocation2 + $0xf8] sm:$0xff]  ;;  %v308_v52 = vld [vmem:[#allocation2 + $0xf0] sm:$0xff]  ;;  %v307_v53 = vld [vmem:[#allocation2 + $0xe8] sm:$0xff] }
 0x26e   :  { %1506 = vmatpush3.msra.mxu0 %v309_v51  ;;  %v306_v54 = vld [vmem:[#allocation2 + $0xe0] sm:$0xff]  ;;  %v305_v55 = vld [vmem:[#allocation2 + $0xd8] sm:$0xff]  ;;  %v304_v56 = vld [vmem:[#allocation2 + $0xd0] sm:$0xff] }
 0x26f   :  { %1507 = vmatprep.subr.mxu0 %v2098_v8  ;;  %v303_v57 = vld [vmem:[#allocation2 + $0xc8] sm:$0xff]  ;;  %v302_v58 = vld [vmem:[#allocation2 + $0xc0] sm:$0xff]  ;;  %v301_v59 = vld [vmem:[#allocation2 + $0xb8] sm:$0xff] }
 0x270   :  { %1508 = vmatpush3.msra.mxu0 %v308_v52  ;;  %v300_v60 = vld [vmem:[#allocation2 + $0xb0] sm:$0xff]  ;;  %v299_v61 = vld [vmem:[#allocation2 + $0xa8] sm:$0xff]  ;;  %v298_v62 = vld [vmem:[#allocation2 + $0xa0] sm:$0xff] }
 0x271   :  { %1509 = vmatprep.subr.mxu0 %v2098_v8  ;;  %v297_v63 = vld [vmem:[#allocation2 + $0x98] sm:$0xff]  ;;  %v296_v0 = vld [vmem:[#allocation2 + $0x90] sm:$0xff]  ;;  %v295_v1 = vld [vmem:[#allocation2 + $0x88] sm:$0xff] }
 0x272   :  { %1510 = vmatpush3.msra.mxu0 %v307_v53  ;;  %v294_v2 = vld [vmem:[#allocation2 + $0x80] sm:$0xff] }
 0x273   :  { %1511 = vmatprep.subr.mxu0 %v2098_v8 }
 0x274   :  { %1512 = vmatpush3.msra.mxu0 %v306_v54 }
 0x275   :  { %1513 = vmatprep.subr.mxu0 %v2098_v8 }
 0x276   :  { %1514 = vmatpush3.msra.mxu0 %v305_v55 }
 0x277   :  { %1515 = vmatprep.subr.mxu0 %v2098_v8 }
 0x278   :  { %1516 = vmatpush3.msra.mxu0 %v304_v56 }
 0x279   :  { %1517 = vmatprep.subr.mxu0 %v2098_v8 }
 0x27a   :  { %1518 = vmatpush3.msra.mxu0 %v303_v57 }
 0x27b   :  { %1519 = vmatprep.subr.mxu0 %v2098_v8 }
 0x27c   :  { %1520 = vmatpush3.msra.mxu0 %v302_v58 }
 0x27d   :  { %1521 = vmatprep.subr.mxu0 %v2098_v8 }
 0x27e   :  { %1522 = vmatpush3.msra.mxu0 %v301_v59 }
 0x27f   :  { %1523 = vmatprep.subr.mxu0 %v2098_v8 }
 0x280   :  { %1524 = vmatpush3.msra.mxu0 %v300_v60 }
 0x281   :  { %1525 = vmatprep.subr.mxu0 %v2098_v8 }
 0x282   :  { %1526 = vmatpush3.msra.mxu0 %v299_v61 }
 0x283   :  { %1527 = vmatprep.subr.mxu0 %v2098_v8 }
 0x284   :  { %1528 = vmatpush3.msra.mxu0 %v298_v62 }
 0x285   :  { %1529 = vmatprep.subr.mxu0 %v2098_v8 }
 0x286   :  { %1530 = vmatpush3.msra.mxu0 %v297_v63 }
 0x287   :  { %1531 = vmatprep.subr.mxu0 %v2098_v8 }
 0x288   :  { %1532 = vmatpush3.msra.mxu0 %v296_v0 }
 0x289   :  { %1533 = vmatprep.subr.mxu0 %v2098_v8 }
 0x28a   :  { %1534 = vmatpush3.msra.mxu0 %v295_v1 }
 0x28b   :  { %1535 = vmatprep.subr.mxu0 %v2098_v8 }
 0x28c   :  { %1536 = vmatpush3.msra.mxu0 %v294_v2 }
 0x28d   :  { %1538 = vmatmul.mubr.f32.vlgmr.msra.gmra.mxu0 %v279_v50 }
 0x34d   :  { %v384_v4 = vpop.f32.mrf.mxu0 }
 0x34e   :  { %v385_v5 = vadd.f32 %v1247_v3, %v384_v4 }
 0x34f   :  { %v1539_v6 = vpop.f32.mrf.mxu0 }
 0x350   :  { %v388_v7 = vmax.f32 %v385_v5, 0.0 }
 0x351   :  { %2079 = dma.done.wait [#allocation3], 2048 }
 0x352   :  { %2080 = vsyncadd [#allocation3], 4294965248  ;;  %s391_s21 = scalar_lea.hbm %s2458_s1, 10240  ;;  %1540 = vmatprep.subr.mxu1 %v2098_v8  ;;  %1572 = vmatprep.mubr.msk.f32.mxu1 %vm2099_vm0, %v2098_v8 }
 0x353   :  { %1934 = shalt.err (!%p2155_p9)  }
 0x354   :  { %402 = dma.hbm_to_vmem [thread:$0]  %s391_s21, 2048, %s2149_s20, [#allocation3 + $0x1]  ;;  %v1249_v25 = vld [vmem:[%s2459_s2 + $0x4] ss:$0 sm:$0xff] }
 0x355   :  { %v418_v9 = vld [vmem:[#allocation2 + $0x78] sm:$0xff]  ;;  %v417_v10 = vld [vmem:[#allocation2 + $0x70] sm:$0xff]  ;;  %v416_v11 = vld [vmem:[#allocation2 + $0x68] sm:$0xff] }
 0x356   :  { %1541 = vmatpush3.msra.mxu1 %v418_v9  ;;  %v415_v12 = vld [vmem:[#allocation2 + $0x60] sm:$0xff]  ;;  %v414_v13 = vld [vmem:[#allocation2 + $0x58] sm:$0xff]  ;;  %v413_v14 = vld [vmem:[#allocation2 + $0x50] sm:$0xff] }
 0x357   :  { %1542 = vmatprep.subr.mxu1 %v2098_v8  ;;  %v412_v15 = vld [vmem:[#allocation2 + $0x48] sm:$0xff]  ;;  %v411_v16 = vld [vmem:[#allocation2 + $0x40] sm:$0xff]  ;;  %v410_v17 = vld [vmem:[#allocation2 + $0x38] sm:$0xff] }
 0x358   :  { %1543 = vmatpush3.msra.mxu1 %v417_v10  ;;  %v409_v18 = vld [vmem:[#allocation2 + $0x30] sm:$0xff]  ;;  %v408_v19 = vld [vmem:[#allocation2 + $0x28] sm:$0xff]  ;;  %v407_v20 = vld [vmem:[#allocation2 + $0x20] sm:$0xff] }
 0x359   :  { %1544 = vmatprep.subr.mxu1 %v2098_v8  ;;  %v406_v21 = vld [vmem:[#allocation2 + $0x18] sm:$0xff]  ;;  %v405_v22 = vld [vmem:[#allocation2 + $0x10] sm:$0xff]  ;;  %v404_v23 = vld [vmem:[#allocation2 + $0x8] sm:$0xff] }
 0x35a   :  { %1545 = vmatpush3.msra.mxu1 %v416_v11  ;;  %v403_v24 = vld [vmem:[#allocation2] sm:$0xff] }
 0x35b   :  { %1546 = vmatprep.subr.mxu1 %v2098_v8 }
 0x35c   :  { %1547 = vmatpush3.msra.mxu1 %v415_v12 }
 0x35d   :  { %1548 = vmatprep.subr.mxu1 %v2098_v8 }
 0x35e   :  { %1549 = vmatpush3.msra.mxu1 %v414_v13 }
 0x35f   :  { %1550 = vmatprep.subr.mxu1 %v2098_v8 }
 0x360   :  { %1551 = vmatpush3.msra.mxu1 %v413_v14 }
 0x361   :  { %1552 = vmatprep.subr.mxu1 %v2098_v8 }
 0x362   :  { %1553 = vmatpush3.msra.mxu1 %v412_v15 }
 0x363   :  { %1554 = vmatprep.subr.mxu1 %v2098_v8 }
 0x364   :  { %1555 = vmatpush3.msra.mxu1 %v411_v16 }
 0x365   :  { %1556 = vmatprep.subr.mxu1 %v2098_v8 }
 0x366   :  { %1557 = vmatpush3.msra.mxu1 %v410_v17 }
 0x367   :  { %1558 = vmatprep.subr.mxu1 %v2098_v8 }
 0x368   :  { %1559 = vmatpush3.msra.mxu1 %v409_v18 }
 0x369   :  { %1560 = vmatprep.subr.mxu1 %v2098_v8 }
 0x36a   :  { %1561 = vmatpush3.msra.mxu1 %v408_v19 }
 0x36b   :  { %1562 = vmatprep.subr.mxu1 %v2098_v8 }
 0x36c   :  { %1563 = vmatpush3.msra.mxu1 %v407_v20 }
 0x36d   :  { %1564 = vmatprep.subr.mxu1 %v2098_v8 }
 0x36e   :  { %1565 = vmatpush3.msra.mxu1 %v406_v21 }
 0x36f   :  { %1566 = vmatprep.subr.mxu1 %v2098_v8 }
 0x370   :  { %1567 = vmatpush3.msra.mxu1 %v405_v22 }
 0x371   :  { %1568 = vmatprep.subr.mxu1 %v2098_v8 }
 0x372   :  { %1569 = vmatpush3.msra.mxu1 %v404_v23 }
 0x373   :  { %1570 = vmatprep.subr.mxu1 %v2098_v8 }
 0x374   :  { %1571 = vmatpush3.msra.mxu1 %v403_v24 }
 0x375   :  { %1573 = vmatmul.mubr.f32.vlgmr.msra.gmra.mxu1 %v388_v7 }
 0x435   :  { %v493_v26 = vpop.f32.mrf.mxu1 }
 0x436   :  { %v494_v27 = vadd.f32 %v1249_v25, %v493_v26 }
 0x437   :  { %v1574_v28 = vpop.f32.mrf.mxu1 }
 0x438   :  { %v497_v29 = vmax.f32 %v494_v27, 0.0 }
 0x439   :  { %2081 = dma.done.wait [#allocation3 + $0x1], 2048 }
 0x43a   :  { %2082 = vsyncadd [#allocation3 + $0x1], 4294965248  ;;  %s500_s27 = scalar_lea.hbm %s2458_s1, 12288  ;;  %1575 = vmatprep.subr.mxu0 %v2098_v8  ;;  %1607 = vmatprep.mubr.msk.f32.mxu0 %vm2099_vm0, %v2098_v8 }
 0x43b   :  { %1957 = shalt.err (!%p2139_p4)  }
 0x43c   :  { %511 = dma.hbm_to_vmem [thread:$0]  %s500_s27, 2048, %s2132_s18, [#allocation3]  ;;  %v1251_v46 = vld [vmem:[%s2459_s2 + $0x5] ss:$0 sm:$0xff] }
 0x43d   :  { %v527_v30 = vld [vmem:[#allocation2 + $0xf8] sm:$0xff]  ;;  %v526_v31 = vld [vmem:[#allocation2 + $0xf0] sm:$0xff]  ;;  %v525_v32 = vld [vmem:[#allocation2 + $0xe8] sm:$0xff] }
 0x43e   :  { %1576 = vmatpush3.msra.mxu0 %v527_v30  ;;  %v524_v33 = vld [vmem:[#allocation2 + $0xe0] sm:$0xff]  ;;  %v523_v34 = vld [vmem:[#allocation2 + $0xd8] sm:$0xff]  ;;  %v522_v35 = vld [vmem:[#allocation2 + $0xd0] sm:$0xff] }
 0x43f   :  { %1577 = vmatprep.subr.mxu0 %v2098_v8  ;;  %v521_v36 = vld [vmem:[#allocation2 + $0xc8] sm:$0xff]  ;;  %v520_v37 = vld [vmem:[#allocation2 + $0xc0] sm:$0xff]  ;;  %v519_v38 = vld [vmem:[#allocation2 + $0xb8] sm:$0xff] }
 0x440   :  { %1578 = vmatpush3.msra.mxu0 %v526_v31  ;;  %v518_v39 = vld [vmem:[#allocation2 + $0xb0] sm:$0xff]  ;;  %v517_v40 = vld [vmem:[#allocation2 + $0xa8] sm:$0xff]  ;;  %v516_v41 = vld [vmem:[#allocation2 + $0xa0] sm:$0xff] }
 0x441   :  { %1579 = vmatprep.subr.mxu0 %v2098_v8  ;;  %v515_v42 = vld [vmem:[#allocation2 + $0x98] sm:$0xff]  ;;  %v514_v43 = vld [vmem:[#allocation2 + $0x90] sm:$0xff]  ;;  %v513_v44 = vld [vmem:[#allocation2 + $0x88] sm:$0xff] }
 0x442   :  { %1580 = vmatpush3.msra.mxu0 %v525_v32  ;;  %v512_v45 = vld [vmem:[#allocation2 + $0x80] sm:$0xff] }
 0x443   :  { %1581 = vmatprep.subr.mxu0 %v2098_v8 }
 0x444   :  { %1582 = vmatpush3.msra.mxu0 %v524_v33 }
 0x445   :  { %1583 = vmatprep.subr.mxu0 %v2098_v8 }
 0x446   :  { %1584 = vmatpush3.msra.mxu0 %v523_v34 }
 0x447   :  { %1585 = vmatprep.subr.mxu0 %v2098_v8 }
 0x448   :  { %1586 = vmatpush3.msra.mxu0 %v522_v35 }
 0x449   :  { %1587 = vmatprep.subr.mxu0 %v2098_v8 }
 0x44a   :  { %1588 = vmatpush3.msra.mxu0 %v521_v36 }
 0x44b   :  { %1589 = vmatprep.subr.mxu0 %v2098_v8 }
 0x44c   :  { %1590 = vmatpush3.msra.mxu0 %v520_v37 }
 0x44d   :  { %1591 = vmatprep.subr.mxu0 %v2098_v8 }
 0x44e   :  { %1592 = vmatpush3.msra.mxu0 %v519_v38 }
 0x44f   :  { %1593 = vmatprep.subr.mxu0 %v2098_v8 }
 0x450   :  { %1594 = vmatpush3.msra.mxu0 %v518_v39 }
 0x451   :  { %1595 = vmatprep.subr.mxu0 %v2098_v8 }
 0x452   :  { %1596 = vmatpush3.msra.mxu0 %v517_v40 }
 0x453   :  { %1597 = vmatprep.subr.mxu0 %v2098_v8 }
 0x454   :  { %1598 = vmatpush3.msra.mxu0 %v516_v41 }
 0x455   :  { %1599 = vmatprep.subr.mxu0 %v2098_v8 }
 0x456   :  { %1600 = vmatpush3.msra.mxu0 %v515_v42 }
 0x457   :  { %1601 = vmatprep.subr.mxu0 %v2098_v8 }
 0x458   :  { %1602 = vmatpush3.msra.mxu0 %v514_v43 }
 0x459   :  { %1603 = vmatprep.subr.mxu0 %v2098_v8 }
 0x45a   :  { %1604 = vmatpush3.msra.mxu0 %v513_v44 }
 0x45b   :  { %1605 = vmatprep.subr.mxu0 %v2098_v8 }
 0x45c   :  { %1606 = vmatpush3.msra.mxu0 %v512_v45 }
 0x45d   :  { %1608 = vmatmul.mubr.f32.vlgmr.msra.gmra.mxu0 %v497_v29 }
 0x51d   :  { %v602_v47 = vpop.f32.mrf.mxu0 }
 0x51e   :  { %v603_v48 = vadd.f32 %v1251_v46, %v602_v47 }
 0x51f   :  { %v1609_v49 = vpop.f32.mrf.mxu0 }
 0x520   :  { %v606_v50 = vmax.f32 %v603_v48, 0.0 }
 0x521   :  { %2083 = dma.done.wait [#allocation3], 2048 }
 0x522   :  { %2084 = vsyncadd [#allocation3], 4294965248  ;;  %s609_s5 = scalar_lea.hbm %s2458_s1, 14336  ;;  %1610 = vmatprep.subr.mxu1 %v2098_v8  ;;  %1642 = vmatprep.mubr.msk.f32.mxu1 %vm2099_vm0, %v2098_v8 }
 0x523   :  { %1980 = shalt.err (!%p2155_p9)  }
 0x524   :  { %620 = dma.hbm_to_vmem [thread:$0]  %s609_s5, 2048, %s2149_s20, [#allocation3 + $0x1]  ;;  %v1253_v3 = vld [vmem:[%s2459_s2 + $0x6] ss:$0 sm:$0xff] }
 0x525   :  { %v636_v51 = vld [vmem:[#allocation2 + $0x78] sm:$0xff]  ;;  %v635_v52 = vld [vmem:[#allocation2 + $0x70] sm:$0xff]  ;;  %v634_v53 = vld [vmem:[#allocation2 + $0x68] sm:$0xff] }
 0x526   :  { %1611 = vmatpush3.msra.mxu1 %v636_v51  ;;  %v633_v54 = vld [vmem:[#allocation2 + $0x60] sm:$0xff]  ;;  %v632_v55 = vld [vmem:[#allocation2 + $0x58] sm:$0xff]  ;;  %v631_v56 = vld [vmem:[#allocation2 + $0x50] sm:$0xff] }
 0x527   :  { %1612 = vmatprep.subr.mxu1 %v2098_v8  ;;  %v630_v57 = vld [vmem:[#allocation2 + $0x48] sm:$0xff]  ;;  %v629_v58 = vld [vmem:[#allocation2 + $0x40] sm:$0xff]  ;;  %v628_v59 = vld [vmem:[#allocation2 + $0x38] sm:$0xff] }
 0x528   :  { %1613 = vmatpush3.msra.mxu1 %v635_v52  ;;  %v627_v60 = vld [vmem:[#allocation2 + $0x30] sm:$0xff]  ;;  %v626_v61 = vld [vmem:[#allocation2 + $0x28] sm:$0xff]  ;;  %v625_v62 = vld [vmem:[#allocation2 + $0x20] sm:$0xff] }
 0x529   :  { %1614 = vmatprep.subr.mxu1 %v2098_v8  ;;  %v624_v63 = vld [vmem:[#allocation2 + $0x18] sm:$0xff]  ;;  %v623_v0 = vld [vmem:[#allocation2 + $0x10] sm:$0xff]  ;;  %v622_v1 = vld [vmem:[#allocation2 + $0x8] sm:$0xff] }
 0x52a   :  { %1615 = vmatpush3.msra.mxu1 %v634_v53  ;;  %v621_v2 = vld [vmem:[#allocation2] sm:$0xff] }
 0x52b   :  { %1616 = vmatprep.subr.mxu1 %v2098_v8 }
 0x52c   :  { %1617 = vmatpush3.msra.mxu1 %v633_v54 }
 0x52d   :  { %1618 = vmatprep.subr.mxu1 %v2098_v8 }
 0x52e   :  { %1619 = vmatpush3.msra.mxu1 %v632_v55 }
 0x52f   :  { %1620 = vmatprep.subr.mxu1 %v2098_v8 }
 0x530   :  { %1621 = vmatpush3.msra.mxu1 %v631_v56 }
 0x531   :  { %1622 = vmatprep.subr.mxu1 %v2098_v8 }
 0x532   :  { %1623 = vmatpush3.msra.mxu1 %v630_v57 }
 0x533   :  { %1624 = vmatprep.subr.mxu1 %v2098_v8 }
 0x534   :  { %1625 = vmatpush3.msra.mxu1 %v629_v58 }
 0x535   :  { %1626 = vmatprep.subr.mxu1 %v2098_v8 }
 0x536   :  { %1627 = vmatpush3.msra.mxu1 %v628_v59 }
 0x537   :  { %1628 = vmatprep.subr.mxu1 %v2098_v8 }
 0x538   :  { %1629 = vmatpush3.msra.mxu1 %v627_v60 }
 0x539   :  { %1630 = vmatprep.subr.mxu1 %v2098_v8 }
 0x53a   :  { %1631 = vmatpush3.msra.mxu1 %v626_v61 }
 0x53b   :  { %1632 = vmatprep.subr.mxu1 %v2098_v8 }
 0x53c   :  { %1633 = vmatpush3.msra.mxu1 %v625_v62 }
 0x53d   :  { %1634 = vmatprep.subr.mxu1 %v2098_v8 }
 0x53e   :  { %1635 = vmatpush3.msra.mxu1 %v624_v63 }
 0x53f   :  { %1636 = vmatprep.subr.mxu1 %v2098_v8 }
 0x540   :  { %1637 = vmatpush3.msra.mxu1 %v623_v0 }
 0x541   :  { %1638 = vmatprep.subr.mxu1 %v2098_v8 }
 0x542   :  { %1639 = vmatpush3.msra.mxu1 %v622_v1 }
 0x543   :  { %1640 = vmatprep.subr.mxu1 %v2098_v8 }
 0x544   :  { %1641 = vmatpush3.msra.mxu1 %v621_v2 }
 0x545   :  { %1643 = vmatmul.mubr.f32.vlgmr.msra.gmra.mxu1 %v606_v50 }
 0x605   :  { %v711_v4 = vpop.f32.mrf.mxu1 }
 0x606   :  { %v712_v5 = vadd.f32 %v1253_v3, %v711_v4 }
 0x607   :  { %v1644_v6 = vpop.f32.mrf.mxu1 }
 0x608   :  { %v715_v7 = vmax.f32 %v712_v5, 0.0 }
 0x609   :  { %2085 = dma.done.wait [#allocation3 + $0x1], 2048 }
 0x60a   :  { %2086 = vsyncadd [#allocation3 + $0x1], 4294965248  ;;  %s718_s10 = scalar_lea.hbm %s2458_s1, 16384  ;;  %1645 = vmatprep.subr.mxu0 %v2098_v8  ;;  %1677 = vmatprep.mubr.msk.f32.mxu0 %vm2099_vm0, %v2098_v8 }
 0x60b   :  { %2003 = shalt.err (!%p2139_p4)  }
 0x60c   :  { %729 = dma.hbm_to_vmem [thread:$0]  %s718_s10, 2048, %s2132_s18, [#allocation3]  ;;  %v1255_v25 = vld [vmem:[%s2459_s2 + $0x7] ss:$0 sm:$0xff] }
 0x60d   :  { %v745_v9 = vld [vmem:[#allocation2 + $0xf8] sm:$0xff]  ;;  %v744_v10 = vld [vmem:[#allocation2 + $0xf0] sm:$0xff]  ;;  %v743_v11 = vld [vmem:[#allocation2 + $0xe8] sm:$0xff] }
 0x60e   :  { %1646 = vmatpush3.msra.mxu0 %v745_v9  ;;  %v742_v12 = vld [vmem:[#allocation2 + $0xe0] sm:$0xff]  ;;  %v741_v13 = vld [vmem:[#allocation2 + $0xd8] sm:$0xff]  ;;  %v740_v14 = vld [vmem:[#allocation2 + $0xd0] sm:$0xff] }
 0x60f   :  { %1647 = vmatprep.subr.mxu0 %v2098_v8  ;;  %v739_v15 = vld [vmem:[#allocation2 + $0xc8] sm:$0xff]  ;;  %v738_v16 = vld [vmem:[#allocation2 + $0xc0] sm:$0xff]  ;;  %v737_v17 = vld [vmem:[#allocation2 + $0xb8] sm:$0xff] }
 0x610   :  { %1648 = vmatpush3.msra.mxu0 %v744_v10  ;;  %v736_v18 = vld [vmem:[#allocation2 + $0xb0] sm:$0xff]  ;;  %v735_v19 = vld [vmem:[#allocation2 + $0xa8] sm:$0xff]  ;;  %v734_v20 = vld [vmem:[#allocation2 + $0xa0] sm:$0xff] }
 0x611   :  { %1649 = vmatprep.subr.mxu0 %v2098_v8  ;;  %v733_v21 = vld [vmem:[#allocation2 + $0x98] sm:$0xff]  ;;  %v732_v22 = vld [vmem:[#allocation2 + $0x90] sm:$0xff]  ;;  %v731_v23 = vld [vmem:[#allocation2 + $0x88] sm:$0xff] }
 0x612   :  { %1650 = vmatpush3.msra.mxu0 %v743_v11  ;;  %v730_v24 = vld [vmem:[#allocation2 + $0x80] sm:$0xff] }
 0x613   :  { %1651 = vmatprep.subr.mxu0 %v2098_v8 }
 0x614   :  { %1652 = vmatpush3.msra.mxu0 %v742_v12 }
 0x615   :  { %1653 = vmatprep.subr.mxu0 %v2098_v8 }
 0x616   :  { %1654 = vmatpush3.msra.mxu0 %v741_v13 }
 0x617   :  { %1655 = vmatprep.subr.mxu0 %v2098_v8 }
 0x618   :  { %1656 = vmatpush3.msra.mxu0 %v740_v14 }
 0x619   :  { %1657 = vmatprep.subr.mxu0 %v2098_v8 }
 0x61a   :  { %1658 = vmatpush3.msra.mxu0 %v739_v15 }
 0x61b   :  { %1659 = vmatprep.subr.mxu0 %v2098_v8 }
 0x61c   :  { %1660 = vmatpush3.msra.mxu0 %v738_v16 }
 0x61d   :  { %1661 = vmatprep.subr.mxu0 %v2098_v8 }
 0x61e   :  { %1662 = vmatpush3.msra.mxu0 %v737_v17 }
 0x61f   :  { %1663 = vmatprep.subr.mxu0 %v2098_v8 }
 0x620   :  { %1664 = vmatpush3.msra.mxu0 %v736_v18 }
 0x621   :  { %1665 = vmatprep.subr.mxu0 %v2098_v8 }
 0x622   :  { %1666 = vmatpush3.msra.mxu0 %v735_v19 }
 0x623   :  { %1667 = vmatprep.subr.mxu0 %v2098_v8 }
 0x624   :  { %1668 = vmatpush3.msra.mxu0 %v734_v20 }
 0x625   :  { %1669 = vmatprep.subr.mxu0 %v2098_v8 }
 0x626   :  { %1670 = vmatpush3.msra.mxu0 %v733_v21 }
 0x627   :  { %1671 = vmatprep.subr.mxu0 %v2098_v8 }
 0x628   :  { %1672 = vmatpush3.msra.mxu0 %v732_v22 }
 0x629   :  { %1673 = vmatprep.subr.mxu0 %v2098_v8 }
 0x62a   :  { %1674 = vmatpush3.msra.mxu0 %v731_v23 }
 0x62b   :  { %1675 = vmatprep.subr.mxu0 %v2098_v8 }
 0x62c   :  { %1676 = vmatpush3.msra.mxu0 %v730_v24 }
 0x62d   :  { %1678 = vmatmul.mubr.f32.vlgmr.msra.gmra.mxu0 %v715_v7 }
 0x6ed   :  { %v820_v26 = vpop.f32.mrf.mxu0 }
 0x6ee   :  { %v821_v27 = vadd.f32 %v1255_v25, %v820_v26 }
 0x6ef   :  { %v1679_v28 = vpop.f32.mrf.mxu0 }
 0x6f0   :  { %v824_v29 = vmax.f32 %v821_v27, 0.0 }
 0x6f1   :  { %2087 = dma.done.wait [#allocation3], 2048 }
 0x6f2   :  { %2088 = vsyncadd [#allocation3], 4294965248  ;;  %s827_s15 = scalar_lea.hbm %s2458_s1, 18432  ;;  %1680 = vmatprep.subr.mxu1 %v2098_v8  ;;  %1712 = vmatprep.mubr.msk.f32.mxu1 %vm2099_vm0, %v2098_v8 }
 0x6f3   :  { %2026 = shalt.err (!%p2155_p9)  }
 0x6f4   :  { %838 = dma.hbm_to_vmem [thread:$0]  %s827_s15, 2048, %s2149_s20, [#allocation3 + $0x1]  ;;  %v1257_v46 = vld [vmem:[%s2459_s2 + $0x8] ss:$0 sm:$0xff] }
 0x6f5   :  { %v854_v30 = vld [vmem:[#allocation2 + $0x78] sm:$0xff]  ;;  %v853_v31 = vld [vmem:[#allocation2 + $0x70] sm:$0xff]  ;;  %v852_v32 = vld [vmem:[#allocation2 + $0x68] sm:$0xff] }
 0x6f6   :  { %1681 = vmatpush3.msra.mxu1 %v854_v30  ;;  %v851_v33 = vld [vmem:[#allocation2 + $0x60] sm:$0xff]  ;;  %v850_v34 = vld [vmem:[#allocation2 + $0x58] sm:$0xff]  ;;  %v849_v35 = vld [vmem:[#allocation2 + $0x50] sm:$0xff] }
 0x6f7   :  { %1682 = vmatprep.subr.mxu1 %v2098_v8  ;;  %v848_v36 = vld [vmem:[#allocation2 + $0x48] sm:$0xff]  ;;  %v847_v37 = vld [vmem:[#allocation2 + $0x40] sm:$0xff]  ;;  %v846_v38 = vld [vmem:[#allocation2 + $0x38] sm:$0xff] }
 0x6f8   :  { %1683 = vmatpush3.msra.mxu1 %v853_v31  ;;  %v845_v39 = vld [vmem:[#allocation2 + $0x30] sm:$0xff]  ;;  %v844_v40 = vld [vmem:[#allocation2 + $0x28] sm:$0xff]  ;;  %v843_v41 = vld [vmem:[#allocation2 + $0x20] sm:$0xff] }
 0x6f9   :  { %1684 = vmatprep.subr.mxu1 %v2098_v8  ;;  %v842_v42 = vld [vmem:[#allocation2 + $0x18] sm:$0xff]  ;;  %v841_v43 = vld [vmem:[#allocation2 + $0x10] sm:$0xff]  ;;  %v840_v44 = vld [vmem:[#allocation2 + $0x8] sm:$0xff] }
 0x6fa   :  { %1685 = vmatpush3.msra.mxu1 %v852_v32  ;;  %v839_v45 = vld [vmem:[#allocation2] sm:$0xff] }
 0x6fb   :  { %1686 = vmatprep.subr.mxu1 %v2098_v8 }
 0x6fc   :  { %1687 = vmatpush3.msra.mxu1 %v851_v33 }
 0x6fd   :  { %1688 = vmatprep.subr.mxu1 %v2098_v8 }
 0x6fe   :  { %1689 = vmatpush3.msra.mxu1 %v850_v34 }
 0x6ff   :  { %1690 = vmatprep.subr.mxu1 %v2098_v8 }
 0x700   :  { %1691 = vmatpush3.msra.mxu1 %v849_v35 }
 0x701   :  { %1692 = vmatprep.subr.mxu1 %v2098_v8 }
 0x702   :  { %1693 = vmatpush3.msra.mxu1 %v848_v36 }
 0x703   :  { %1694 = vmatprep.subr.mxu1 %v2098_v8 }
 0x704   :  { %1695 = vmatpush3.msra.mxu1 %v847_v37 }
 0x705   :  { %1696 = vmatprep.subr.mxu1 %v2098_v8 }
 0x706   :  { %1697 = vmatpush3.msra.mxu1 %v846_v38 }
 0x707   :  { %1698 = vmatprep.subr.mxu1 %v2098_v8 }
 0x708   :  { %1699 = vmatpush3.msra.mxu1 %v845_v39 }
 0x709   :  { %1700 = vmatprep.subr.mxu1 %v2098_v8 }
 0x70a   :  { %1701 = vmatpush3.msra.mxu1 %v844_v40 }
 0x70b   :  { %1702 = vmatprep.subr.mxu1 %v2098_v8 }
 0x70c   :  { %1703 = vmatpush3.msra.mxu1 %v843_v41 }
 0x70d   :  { %1704 = vmatprep.subr.mxu1 %v2098_v8 }
 0x70e   :  { %1705 = vmatpush3.msra.mxu1 %v842_v42 }
 0x70f   :  { %1706 = vmatprep.subr.mxu1 %v2098_v8 }
 0x710   :  { %1707 = vmatpush3.msra.mxu1 %v841_v43 }
 0x711   :  { %1708 = vmatprep.subr.mxu1 %v2098_v8 }
 0x712   :  { %1709 = vmatpush3.msra.mxu1 %v840_v44 }
 0x713   :  { %1710 = vmatprep.subr.mxu1 %v2098_v8 }
 0x714   :  { %1711 = vmatpush3.msra.mxu1 %v839_v45 }
 0x715   :  { %1713 = vmatmul.mubr.f32.vlgmr.msra.gmra.mxu1 %v824_v29 }
 0x7d5   :  { %v929_v47 = vpop.f32.mrf.mxu1 }
 0x7d6   :  { %v930_v48 = vadd.f32 %v1257_v46, %v929_v47 }
 0x7d7   :  { %v1714_v49 = vpop.f32.mrf.mxu1 }
 0x7d8   :  { %v933_v50 = vmax.f32 %v930_v48, 0.0 }
 0x7d9   :  { %2089 = dma.done.wait [#allocation3 + $0x1], 2048 }
 0x7da   :  { %2090 = vsyncadd [#allocation3 + $0x1], 4294965248  ;;  %s936_s19 = scalar_lea.hbm %s2458_s1, 20480  ;;  %1715 = vmatprep.subr.mxu0 %v2098_v8  ;;  %1747 = vmatprep.mubr.msk.f32.mxu0 %vm2099_vm0, %v2098_v8 }
 0x7db   :  { %2049 = shalt.err (!%p2139_p4)  }
 0x7dc   :  { %947 = dma.hbm_to_vmem [thread:$0]  %s936_s19, 2048, %s2132_s18, [#allocation3]  ;;  %v1259_v3 = vld [vmem:[%s2459_s2 + $0x9] ss:$0 sm:$0xff] }
 0x7dd   :  { %v963_v51 = vld [vmem:[#allocation2 + $0xf8] sm:$0xff]  ;;  %v962_v52 = vld [vmem:[#allocation2 + $0xf0] sm:$0xff]  ;;  %v961_v53 = vld [vmem:[#allocation2 + $0xe8] sm:$0xff] }
 0x7de   :  { %1716 = vmatpush3.msra.mxu0 %v963_v51  ;;  %v960_v54 = vld [vmem:[#allocation2 + $0xe0] sm:$0xff]  ;;  %v959_v55 = vld [vmem:[#allocation2 + $0xd8] sm:$0xff]  ;;  %v958_v56 = vld [vmem:[#allocation2 + $0xd0] sm:$0xff] }
 0x7df   :  { %1717 = vmatprep.subr.mxu0 %v2098_v8  ;;  %v957_v57 = vld [vmem:[#allocation2 + $0xc8] sm:$0xff]  ;;  %v956_v58 = vld [vmem:[#allocation2 + $0xc0] sm:$0xff]  ;;  %v955_v59 = vld [vmem:[#allocation2 + $0xb8] sm:$0xff] }
 0x7e0   :  { %1718 = vmatpush3.msra.mxu0 %v962_v52  ;;  %v954_v60 = vld [vmem:[#allocation2 + $0xb0] sm:$0xff]  ;;  %v953_v61 = vld [vmem:[#allocation2 + $0xa8] sm:$0xff]  ;;  %v952_v62 = vld [vmem:[#allocation2 + $0xa0] sm:$0xff] }
 0x7e1   :  { %1719 = vmatprep.subr.mxu0 %v2098_v8  ;;  %v951_v63 = vld [vmem:[#allocation2 + $0x98] sm:$0xff]  ;;  %v950_v0 = vld [vmem:[#allocation2 + $0x90] sm:$0xff]  ;;  %v949_v1 = vld [vmem:[#allocation2 + $0x88] sm:$0xff] }
 0x7e2   :  { %1720 = vmatpush3.msra.mxu0 %v961_v53  ;;  %v948_v2 = vld [vmem:[#allocation2 + $0x80] sm:$0xff] }
 0x7e3   :  { %1721 = vmatprep.subr.mxu0 %v2098_v8 }
 0x7e4   :  { %1722 = vmatpush3.msra.mxu0 %v960_v54 }
 0x7e5   :  { %1723 = vmatprep.subr.mxu0 %v2098_v8 }
 0x7e6   :  { %1724 = vmatpush3.msra.mxu0 %v959_v55 }
 0x7e7   :  { %1725 = vmatprep.subr.mxu0 %v2098_v8 }
 0x7e8   :  { %1726 = vmatpush3.msra.mxu0 %v958_v56 }
 0x7e9   :  { %1727 = vmatprep.subr.mxu0 %v2098_v8 }
 0x7ea   :  { %1728 = vmatpush3.msra.mxu0 %v957_v57 }
 0x7eb   :  { %1729 = vmatprep.subr.mxu0 %v2098_v8 }
 0x7ec   :  { %1730 = vmatpush3.msra.mxu0 %v956_v58 }
 0x7ed   :  { %1731 = vmatprep.subr.mxu0 %v2098_v8 }
 0x7ee   :  { %1732 = vmatpush3.msra.mxu0 %v955_v59 }
 0x7ef   :  { %1733 = vmatprep.subr.mxu0 %v2098_v8 }
 0x7f0   :  { %1734 = vmatpush3.msra.mxu0 %v954_v60 }
 0x7f1   :  { %1735 = vmatprep.subr.mxu0 %v2098_v8 }
 0x7f2   :  { %1736 = vmatpush3.msra.mxu0 %v953_v61 }
 0x7f3   :  { %1737 = vmatprep.subr.mxu0 %v2098_v8 }
 0x7f4   :  { %1738 = vmatpush3.msra.mxu0 %v952_v62 }
 0x7f5   :  { %1739 = vmatprep.subr.mxu0 %v2098_v8 }
 0x7f6   :  { %1740 = vmatpush3.msra.mxu0 %v951_v63 }
 0x7f7   :  { %1741 = vmatprep.subr.mxu0 %v2098_v8 }
 0x7f8   :  { %1742 = vmatpush3.msra.mxu0 %v950_v0 }
 0x7f9   :  { %1743 = vmatprep.subr.mxu0 %v2098_v8 }
 0x7fa   :  { %1744 = vmatpush3.msra.mxu0 %v949_v1 }
 0x7fb   :  { %1745 = vmatprep.subr.mxu0 %v2098_v8 }
 0x7fc   :  { %1746 = vmatpush3.msra.mxu0 %v948_v2 }
 0x7fd   :  { %1748 = vmatmul.mubr.f32.vlgmr.msra.gmra.mxu0 %v933_v50 }
 0x8bd   :  { %v1038_v4 = vpop.f32.mrf.mxu0 }
 0x8be   :  { %v1039_v5 = vadd.f32 %v1259_v3, %v1038_v4 }
 0x8bf   :  { %v1749_v6 = vpop.f32.mrf.mxu0 }
 0x8c0   :  { %v1042_v7 = vmax.f32 %v1039_v5, 0.0 }
 0x8c1   :  { %2091 = dma.done.wait [#allocation3], 2048 }
 0x8c2   :  { %2092 = vsyncadd [#allocation3], 4294965248  ;;  %1750 = vmatprep.subr.mxu1 %v2098_v8  ;;  %1782 = vmatprep.mubr.msk.f32.mxu1 %vm2099_vm0, %v2098_v8  ;;  %v1060_v9 = vld [vmem:[#allocation2 + $0x78] sm:$0xff]  ;;  %v1059_v10 = vld [vmem:[#allocation2 + $0x70] sm:$0xff]  ;;  %s2100_s22 = smov 120   ;;  %s2101_s0 = smov 124   ;;  %v1193_v42 = vlaneseq }
 0x8c3   :  { %1751 = vmatpush3.msra.mxu1 %v1060_v9  ;;  %v1058_v11 = vld [vmem:[#allocation2 + $0x68] sm:$0xff]  ;;  %v1057_v12 = vld [vmem:[#allocation2 + $0x60] sm:$0xff]  ;;  %v1056_v13 = vld [vmem:[#allocation2 + $0x58] sm:$0xff]  ;;  %s2102_s24 = smov 12   ;;  %s2103_s25 = smov 4   ;;  %vm1159_vm1 = vcmask 31744  }
 0x8c4   :  { %1752 = vmatprep.subr.mxu1 %v2098_v8  ;;  %v1055_v14 = vld [vmem:[#allocation2 + $0x50] sm:$0xff]  ;;  %v1054_v15 = vld [vmem:[#allocation2 + $0x48] sm:$0xff]  ;;  %v1053_v16 = vld [vmem:[#allocation2 + $0x40] sm:$0xff]  ;;  %vm1161_vm2 = vcmask 64512   ;;  %vm1163_vm3 = vcmask 97280   ;;  %v1194_v43 = vand.u32 127, %v1193_v42 }
 0x8c5   :  { %1753 = vmatpush3.msra.mxu1 %v1059_v10  ;;  %v1052_v17 = vld [vmem:[#allocation2 + $0x38] sm:$0xff]  ;;  %v1051_v18 = vld [vmem:[#allocation2 + $0x30] sm:$0xff]  ;;  %v1050_v19 = vld [vmem:[#allocation2 + $0x28] sm:$0xff]  ;;  %s2105_s27 = smov [#allocation4]   ;;  %vm1210_vm5 = vcmask 130048  }
 0x8c6   :  { %1754 = vmatprep.subr.mxu1 %v2098_v8  ;;  %v1049_v20 = vld [vmem:[#allocation2 + $0x20] sm:$0xff]  ;;  %v1048_v21 = vld [vmem:[#allocation2 + $0x18] sm:$0xff]  ;;  %v1047_v22 = vld [vmem:[#allocation2 + $0x10] sm:$0xff]  ;;  %s1219_s28 = sshll.u32 %s2105_s27, 4  ;;  %s1220_s28 = int_to_ptr.vmem [resolvable:$true] %s1219_s28 }
 0x8c7   :  { %1755 = vmatpush3.msra.mxu1 %v1058_v11  ;;  %v1046_v23 = vld [vmem:[#allocation2 + $0x8] sm:$0xff]  ;;  %v1045_v24 = vld [vmem:[#allocation2] sm:$0xff]  ;;  %s2051_s29 = scalar_lea.vmem %s1220_s28, 128  ;;  %p2056_p11 = scmp.lt.s32.totalorder %s1220_s28, %s1220_s28 }
 0x8c8   :  { %1756 = vmatprep.subr.mxu1 %v2098_v8  ;;  %v1261_v25 = vld [vmem:[%s2459_s2 + $0xa] ss:$0 sm:$0xff]  ;;  %s2104_s2 = smov 8   ;;  %p2052_p10 = scmp.ne.s32.totalorder %s1220_s28, %s2051_s29 }
 0x8c9   :  { %1757 = vmatpush3.msra.mxu1 %v1057_v12  ;;  %p2057_p12 = scmp.lt.s32.totalorder %s2051_s29, %s2051_s29 }
 0x8ca   :  { %1758 = vmatprep.subr.mxu1 %v2098_v8 }
 0x8cb   :  { %1759 = vmatpush3.msra.mxu1 %v1056_v13  ;;  %p2058_p13 = por %p2057_p12, %p2056_p11 }
 0x8cc   :  { %1760 = vmatprep.subr.mxu1 %v2098_v8 }
 0x8cd   :  { %1761 = vmatpush3.msra.mxu1 %v1055_v14  ;;  %p2059_p0 = pnand %p2058_p13, %p2052_p10 }
 0x8ce   :  { %1762 = vmatprep.subr.mxu1 %v2098_v8 }
 0x8cf   :  { %1763 = vmatpush3.msra.mxu1 %v1054_v15 }
 0x8d0   :  { %1764 = vmatprep.subr.mxu1 %v2098_v8 }
 0x8d1   :  { %1765 = vmatpush3.msra.mxu1 %v1053_v16 }
 0x8d2   :  { %1766 = vmatprep.subr.mxu1 %v2098_v8 }
 0x8d3   :  { %1767 = vmatpush3.msra.mxu1 %v1052_v17 }
 0x8d4   :  { %1768 = vmatprep.subr.mxu1 %v2098_v8 }
 0x8d5   :  { %1769 = vmatpush3.msra.mxu1 %v1051_v18 }
 0x8d6   :  { %1770 = vmatprep.subr.mxu1 %v2098_v8 }
 0x8d7   :  { %1771 = vmatpush3.msra.mxu1 %v1050_v19 }
 0x8d8   :  { %1772 = vmatprep.subr.mxu1 %v2098_v8 }
 0x8d9   :  { %1773 = vmatpush3.msra.mxu1 %v1049_v20 }
 0x8da   :  { %1774 = vmatprep.subr.mxu1 %v2098_v8 }
 0x8db   :  { %1775 = vmatpush3.msra.mxu1 %v1048_v21 }
 0x8dc   :  { %1776 = vmatprep.subr.mxu1 %v2098_v8 }
 0x8dd   :  { %1777 = vmatpush3.msra.mxu1 %v1047_v22 }
 0x8de   :  { %1778 = vmatprep.subr.mxu1 %v2098_v8 }
 0x8df   :  { %1779 = vmatpush3.msra.mxu1 %v1046_v23 }
 0x8e0   :  { %1780 = vmatprep.subr.mxu1 %v2098_v8 }
 0x8e1   :  { %1781 = vmatpush3.msra.mxu1 %v1045_v24 }
 0x8e2   :  { %1783 = vmatmul.mubr.f32.vlgmr.msra.gmra.mxu1 %v1042_v7 }
 0x9a2   :  { %v1135_v26 = vpop.f32.mrf.mxu1 }
 0x9a3   :  { %v2429_v27 = vadd.f32 %v1261_v25, %v1135_v26 }
 0x9a4   :  { %v1784_v28 = vpop.f32.mrf.mxu1 }
 0x9a5   :  { %1140 = vrot.lane.b32.xlu0 %v2429_v27, %s2100_s22 }
 0xa17   :  { %v1141_v29 = vpop.permute.xlu0 %1140 }
 0xa18   :  { %v1143_v30 = vmax.f32 %v2429_v27, %v1141_v29 }
 0xa1a   :  { %1145 = vrot.lane.b32.xlu0 %v1143_v30, %s2101_s0 }
 0xa8c   :  { %v1146_v31 = vpop.permute.xlu0 %1145 }
 0xa8d   :  { %v1148_v32 = vmax.f32 %v1143_v30, %v1146_v31 }
 0xa8f   :  { %1156 = vrot.lane.b32.xlu0 %v1148_v32, %s2102_s24  ;;  %1150 = vrot.lane.b32.xlu1 %v1148_v32, %s2103_s25 }
 0xa93   :  { %1153 = vrot.lane.b32.xlu1 %v1148_v32, %s2104_s2 }
 0xb01   :  { %v1151_v33 = vpop.permute.xlu1 %1150  ;;  %v1157_v36 = vpop.permute.xlu0 %1156 }
 0xb02   :  { %v1160_v34 = vsel %vm1159_vm1, %v1148_v32, %v1151_v33 }
 0xb05   :  { %v1154_v35 = vpop.permute.xlu1 %1153 }
 0xb06   :  { %v1162_v37 = vsel %vm1161_vm2, %v1160_v34, %v1154_v35 }
 0xb07   :  { %v1164_v38 = vsel %vm1163_vm3, %v1162_v37, %v1157_v36 }
 0xb08   :  { %v1165_v39 = vsub.f32 %v2429_v27, %v1164_v38 }
 0xb0a   :  { %v1166_v40 = vmul.f32 1.442695, %v1165_v39 }
 0xb0c   :  { %1797 = vpow2.f32 %v1166_v40 }
 0xb19   :  { %v1798_v41 = vpop.eup %1797 }
 0xb1a   :  { %1169 = vrot.lane.b32.xlu1 %v1798_v41, %s2100_s22 }
 0xb1e   :  { %1195 = vrot.lane.b32.xlu1 %v1194_v43, %s2103_s25 }
 0xb8c   :  { %v1170_v44 = vpop.permute.xlu1 %1169 }
 0xb8d   :  { %v1172_v45 = vadd.f32 %v1798_v41, %v1170_v44 }
 0xb8f   :  { %1174 = vrot.lane.b32.xlu0 %v1172_v45, %s2101_s0 }
 0xb90   :  { %v1196_v49 = vpop.permute.xlu1 %1195 }
 0xb91   :  { %v1201_v51 = vsel %vm1159_vm1, %v1194_v43, %v1196_v49 }
 0xb93   :  { %1197 = vrot.lane.b32.xlu0 %v1194_v43, %s2104_s2 }
 0xb97   :  { %1199 = vrot.lane.b32.xlu0 %v1194_v43, %s2102_s24 }
 0xc01   :  { %v1175_v46 = vpop.permute.xlu0 %1174 }
 0xc02   :  { %v1177_v47 = vadd.f32 %v1175_v46, %v1172_v45 }
 0xc04   :  { %1799 = vrcp.f32 %v1177_v47 }
 0xc05   :  { %v1198_v50 = vpop.permute.xlu0 %1197 }
 0xc06   :  { %v1202_v52 = vsel %vm1161_vm2, %v1201_v51, %v1198_v50 }
 0xc09   :  { %v1200_v53 = vpop.permute.xlu0 %1199 }
 0xc0a   :  { %v1203_v54 = vsel %vm1163_vm3, %v1202_v52, %v1200_v53 }
 0xc0b   :  { %v1204_v56 = vmul.u32 5, %v1203_v54 }
 0xc0d   :  { %vm1205_vm4 = vcmp.eq.s32.totalorder %v1194_v43, %v1204_v56 }
 0xc0e   :  { %v1262_v63 = vsel %vm1205_vm4, 1.0, %v2098_v8 }
 0xc11   :  { %v1800_v48 = vpop.eup %1799 }
 0xc12   :  { %1186 = vrot.lane.b32.xlu0 %v1800_v48, %s2102_s24  ;;  %1180 = vrot.lane.b32.xlu1 %v1800_v48, %s2103_s25 }
 0xc16   :  { %1183 = vrot.lane.b32.xlu1 %v1800_v48, %s2104_s2 }
 0xc84   :  { %v1181_v55 = vpop.permute.xlu1 %1180  ;;  %v1187_v59 = vpop.permute.xlu0 %1186 }
 0xc85   :  { %v1189_v57 = vsel %vm1159_vm1, %v1800_v48, %v1181_v55 }
 0xc88   :  { %v1184_v58 = vpop.permute.xlu1 %1183 }
 0xc89   :  { %v1190_v60 = vsel %vm1161_vm2, %v1189_v57, %v1184_v58 }
 0xc8a   :  { %v1191_v61 = vsel %vm1163_vm3, %v1190_v60, %v1187_v59 }
 0xc8b   :  { %v1192_v62 = vmul.f32 %v1798_v41, %v1191_v61 }
 0xc8d   :  { %v1208_v0 = vadd.f32 %v1262_v63, %v1192_v62 }
 0xc8f   :  { %v1209_v1 = vmul.f32 0.5, %v1208_v0 }
 0xc91   :  { %v1211_v2 = vsel %vm1210_vm5, %v1209_v1, %v2429_v27 }
 0xc92   :  { %1212 = vst [vmem:[#allocation4] sm:$0xff] %v1211_v2 }
 0xc93   :  { %2062 = shalt.err (!%p2059_p0)
}
 0xc94   :  { %1222 = dma.vmem_to_hbm [thread:$0]  %s1220_s28, 128, %s2460_s3, [#allocation5]  }
 0xc95   :  { %2093 = dma.done.wait [#allocation5], 128  }
 0xc96   :  { %2094 = vsyncadd [#allocation5], 4294967168 }
 0xc97   :  { %1226 = vsyncpa [#allocation5], 1 }
 0xc98   :  { %1227 = vsyncmov [#allocation3] }
 0xc9b   :  { %s1228_s5 = vpop.sfrf %1227 }
 0xc9c   :  { %p1263_p1 = scmp.ne.s32.totalorder %s1228_s5, 0 }
 0xc9e   :  { %1232 = shalt.err (%p1263_p1)  }
 0xc9f   :  { %1234 = vsyncmov [#allocation3 + $0x1] }
 0xca2   :  { %s1235_s6 = vpop.sfrf %1234 }
 0xca3   :  { %p1264_p2 = scmp.ne.s32.totalorder %s1235_s6, 0 }
 0xca5   :  { %1239 = shalt.err (%p1264_p2)  }

</bundles_post_ra>
